<compile_context>
chip_gen: v7x
topology: tpu7x:2x2x1
jax: 0.10.0
libtpu: 0.0.40
codegen_flags: <defaults>
</compile_context>

<pallas_src>
import jax
import jax.numpy as jnp
from jax.experimental import pallas as pl
from jax.experimental.pallas import tpu as pltpu


# ----------------------------------------------------------------------------
# Fused kernel: 3 x (GATConv + LayerNorm + ReLU) -> mean pool -> MLP head.
# ----------------------------------------------------------------------------
def fused_gat_model_kernel(
        x_ref, bias_ref,
        w1_ref, w23_ref, a_ref, ln_ref,
        pool_ref, invcnt_ref, gattr_ref,
        fc1w_ref, fc1b_ref, fc2w_ref, fc2b_ref,
        out_ref):
    # Precomputed adjacency bias, kept bf16 in VMEM (promoted lazily in the
    # add below): +log(edge multiplicity) on-graph, -1e30 off-graph so the
    # exp() of masked entries underflows to exactly 0.
    mask_bias = bias_ref[...]                                          # (N,N) bf16

    def gat_ln_relu(x_bf16, w_bf16, a_w, ln):
        b, gamma, beta = ln[0:1, :], ln[1:2, :], ln[2:3, :]            # (1,H) each
        # Linear projection on the MXU (bf16 x bf16 -> f32 accumulate).
        h = jnp.dot(x_bf16, w_bf16,
                    preferred_element_type=jnp.float32)                # (N,H) f32
        h_bf16 = h.astype(jnp.bfloat16)                                # cast once
        # Both attention logits via one tiny MXU matmul; cols = [a_dst, a_src].
        logits = jnp.dot(h_bf16, a_w,
                         preferred_element_type=jnp.float32)           # (N,2)
        a_dst = logits[:, 0:1]                                         # (N,1)
        a_src = logits[:, 1:2]                                         # (N,1)
        # e[i, j] = LeakyReLU(a_dst[i] + a_src[j], slope=0.2) + mask bias.
        # TODO(synk): in the blocked/flash version compute a_src per src tile
        # to avoid this (N,1)->(1,N) XLU relayout.
        e = a_dst + jnp.transpose(a_src)                               # (N,N)
        e = jnp.where(e > 0.0, e, 0.2 * e)
        e = e + mask_bias                                              # bf16 -> f32 promote
        # Row softmax over incoming edges; denominator folded into the
        # aggregation output so no (N,N) normalization multiply is needed.
        m = jnp.max(e, axis=-1, keepdims=True)
        p = jnp.exp(e - m)                                             # (N,N) f32
        denom = jnp.sum(p, axis=-1, keepdims=True)                     # (N,1)
        agg = jnp.dot(p.astype(jnp.bfloat16), h_bf16,
                      preferred_element_type=jnp.float32)              # (N,H)
        # Safe: the self-loop guarantees denom > 0 for every row.
        out = agg * pl.reciprocal(denom, approx=True) + b              # EUP slot
        # LayerNorm (eps = 1e-5) + ReLU, all in f32.
        mu = jnp.mean(out, axis=-1, keepdims=True)
        var = jnp.mean((out - mu) ** 2, axis=-1, keepdims=True)
        y = (out - mu) * jax.lax.rsqrt(var + 1e-5) * gamma + beta
        return jnp.maximum(y, 0.0)

    x1 = gat_ln_relu(x_ref[...], w1_ref[...], a_ref[0], ln_ref[0])
    x2 = gat_ln_relu(x1.astype(jnp.bfloat16), w23_ref[0], a_ref[1], ln_ref[1])
    x3 = gat_ln_relu(x2.astype(jnp.bfloat16), w23_ref[1], a_ref[2], ln_ref[2])

    # global_mean_pool: one-hot (G, N) @ x3, scaled by 1/|graph g| (f32).
    pooled = jnp.dot(pool_ref[...], x3.astype(jnp.bfloat16),
                     preferred_element_type=jnp.float32) * invcnt_ref[...]  # (G,H)

    # fc1(cat(pooled, graph_attr)) == pooled @ W[:H] + graph_attr @ W[H:] + b.
    hdim = pooled.shape[1]
    adim = gattr_ref.shape[1]
    h1 = (jnp.dot(pooled, fc1w_ref[0:hdim, :],
                  preferred_element_type=jnp.float32)
          + jnp.dot(gattr_ref[...], fc1w_ref[hdim:hdim + adim, :],
                    preferred_element_type=jnp.float32)
          + fc1b_ref[...])
    h1 = jnp.maximum(h1, 0.0)
    out_ref[...] = (jnp.dot(h1, fc2w_ref[...],
                            preferred_element_type=jnp.float32) + fc2b_ref[...])


def gat_model_forward(params, x_bf16, mask_bias, pool_onehot, inv_counts,
                      graph_attr):
    n, fin = x_bf16.shape
    g = pool_onehot.shape[0]
    hid = params["fc1_b"].shape[1]
    adim = graph_attr.shape[1]
    out_dim = params["fc2_w"].shape[1]

    args = (x_bf16, mask_bias,
            params["w1"], params["w23"], params["a_all"], params["ln"],
            pool_onehot, inv_counts, graph_attr,
            params["fc1_w"], params["fc1_b"], params["fc2_w"], params["fc2_b"])

    # Advisory cost hint so XLA can schedule surrounding ops around the call.
    flops = (2 * n * fin * hid + 2 * 2 * n * hid * hid          # projections
             + 3 * 2 * n * hid * 2                              # logit matmuls
             + 3 * 2 * n * n * hid                              # aggregation
             + 2 * g * n * hid                                  # pooling
             + 2 * g * (hid + adim) * hid + 2 * g * hid * out_dim)  # MLP head
    transcendentals = 3 * n * n + 4 * n                         # exp + recip/rsqrt
    bytes_accessed = (sum(int(a.size) * a.dtype.itemsize for a in args)
                      + g * out_dim * 4)

    vmem = pl.BlockSpec(memory_space=pltpu.MemorySpace.VMEM)
    return pl.pallas_call(
        fused_gat_model_kernel,
        out_shape=jax.ShapeDtypeStruct((g, out_dim), jnp.float32),
        in_specs=[vmem] * len(args),
        out_specs=vmem,
        cost_estimate=pl.CostEstimate(flops=flops,
                                      transcendentals=transcendentals,
                                      bytes_accessed=bytes_accessed),
        compiler_params=pltpu.CompilerParams(
            vmem_limit_bytes=64 * 1024 * 1024),
    )(*args)


# ----------------------------------------------------------------------------
# Parameter / dense-graph construction.
# ----------------------------------------------------------------------------
def init_params(key, fin, hid, n_attr, out_dim):
    ks = jax.random.split(key, 16)

    def rnd(k, shape):
        return 0.1 * jax.random.normal(k, shape, jnp.float32)

    w1 = rnd(ks[0], (fin, hid))
    w2 = rnd(ks[1], (hid, hid))
    w3 = rnd(ks[2], (hid, hid))
    a_all, ln = [], []
    for i in range(3):
        a_dst = rnd(ks[3 + 2 * i], (hid,))
        a_src = rnd(ks[4 + 2 * i], (hid,))
        # columns [a_dst, a_src]: h @ a -> (N, 2) gives both logits at once.
        a_all.append(jnp.stack([a_dst, a_src], axis=1))                 # (hid, 2)
        bias = 0.01 * jax.random.normal(ks[9 + i], (hid,), jnp.float32)
        # rows [conv bias, LN gamma, LN beta]; nn.LayerNorm defaults.
        ln.append(jnp.stack([bias, jnp.ones((hid,), jnp.float32),
                             jnp.zeros((hid,), jnp.float32)], axis=0))  # (3, hid)

    return {
        "w1": w1.astype(jnp.bfloat16),                                  # (fin, hid)
        "w23": jnp.stack([w2, w3], axis=0).astype(jnp.bfloat16),        # (2, hid, hid)
        "a_all": jnp.stack(a_all, axis=0).astype(jnp.bfloat16),         # (3, hid, 2)
        "ln": jnp.stack(ln, axis=0),                                    # (3, 3, hid) f32
        # fc1 weight for cat(pooled, graph_attr): rows [W_x ; W_graph_attr].
        "fc1_w": jnp.concatenate([rnd(ks[12], (hid, hid)),
                                  rnd(ks[13], (n_attr, hid))], axis=0),
        "fc1_b": jnp.zeros((1, hid), jnp.float32),
        "fc2_w": rnd(ks[14], (hid, out_dim)),
        "fc2_b": jnp.zeros((1, out_dim), jnp.float32),
    }


def build_dense_graph(edge_index, batch, n_nodes, n_graphs):
    """Densify the graph for the fused kernel.

    mask_bias[dst, src] = log(multiplicity of edge src->dst) on-graph
    (duplicates counted, like PyG's edge softmax), -1e30 off-graph, with the
    diagonal forced present (GATConv remove_self_loops + add_self_loops).
    Precomputed here (XLA) and stored bf16 so the kernel does zero N^2
    log/where work and the DMA footprint is halved.
    """
    src, dst = edge_index[0], edge_index[1]
    diag = jnp.arange(n_nodes)
    adj = jnp.zeros((n_nodes, n_nodes), jnp.float32).at[dst, src].add(1.0)
    adj = adj.at[diag, diag].set(1.0)
    mask_bias = jnp.where(adj > 0.0, jnp.log(jnp.maximum(adj, 1.0)),
                          jnp.float32(-1e30)).astype(jnp.bfloat16)
    one_hot = (batch[None, :] == jnp.arange(n_graphs)[:, None]).astype(jnp.float32)
    counts = jnp.sum(one_hot, axis=1, keepdims=True)
    inv_counts = 1.0 / jnp.maximum(counts, 1.0)                          # f32, exact
    return mask_bias, one_hot.astype(jnp.bfloat16), inv_counts


if __name__ == "__main__":
    # Small, module-consistent shapes.
    N_NODES = 32            # total nodes across the batch
    N_GRAPHS = 2            # graphs in the batch
    NUM_NODE_FEATURES = 16
    HIDDEN_DIM = 128
    NUM_GRAPH_ATTRS = 4
    OUTPUT_DIM = 8
    N_EDGES = 64

    key = jax.random.PRNGKey(0)
    k_x, k_e1, k_e2, k_e3, k_g, k_p = jax.random.split(key, 6)

    x = jax.random.normal(k_x, (N_NODES, NUM_NODE_FEATURES), jnp.float32)

    # batch assignment: first half -> graph 0, second half -> graph 1
    nodes_per_graph = N_NODES // N_GRAPHS
    batch = jnp.repeat(jnp.arange(N_GRAPHS), nodes_per_graph)

    # random edges kept within their graph
    gid = jax.random.randint(k_e1, (N_EDGES,), 0, N_GRAPHS)
    src = gid * nodes_per_graph + jax.random.randint(
        k_e2, (N_EDGES,), 0, nodes_per_graph)
    dst = gid * nodes_per_graph + jax.random.randint(
        k_e3, (N_EDGES,), 0, nodes_per_graph)
    edge_index = jnp.stack([src, dst], axis=0)

    graph_attr = jax.random.normal(k_g, (N_GRAPHS, NUM_GRAPH_ATTRS),
                                   jnp.float32)

    mask_bias, pool_onehot, inv_counts = build_dense_graph(
        edge_index, batch, N_NODES, N_GRAPHS)
    params = init_params(k_p, NUM_NODE_FEATURES, HIDDEN_DIM,
                         NUM_GRAPH_ATTRS, OUTPUT_DIM)

    forward = jax.jit(gat_model_forward)
    out = forward(params, x.astype(jnp.bfloat16), mask_bias, pool_onehot,
                  inv_counts, graph_attr)
    out = jax.block_until_ready(out)
    assert out.shape == (N_GRAPHS, OUTPUT_DIM)
    assert jnp.all(jnp.isfinite(out))
    print("KERNEL_OK")
</pallas_src>

<mosaic_0001>
module attributes {stable_mosaic.version = 11 : i64} {
  func.func @fused_gat_model_kernel(%arg0: memref<32x16xbf16, #tpu.memory_space<vmem>>, %arg1: memref<32x32xbf16, #tpu.memory_space<vmem>>, %arg2: memref<16x128xbf16, #tpu.memory_space<vmem>>, %arg3: memref<2x128x128xbf16, #tpu.memory_space<vmem>>, %arg4: memref<3x128x2xbf16, #tpu.memory_space<vmem>>, %arg5: memref<3x3x128xf32, #tpu.memory_space<vmem>>, %arg6: memref<2x32xbf16, #tpu.memory_space<vmem>>, %arg7: memref<2x1xf32, #tpu.memory_space<vmem>>, %arg8: memref<2x4xf32, #tpu.memory_space<vmem>>, %arg9: memref<132x128xf32, #tpu.memory_space<vmem>>, %arg10: memref<1x128xf32, #tpu.memory_space<vmem>>, %arg11: memref<128x8xf32, #tpu.memory_space<vmem>>, %arg12: memref<1x8xf32, #tpu.memory_space<vmem>>, %arg13: memref<2x8xf32, #tpu.memory_space<vmem>>) attributes {dimension_semantics = [], scalar_prefetch = 0 : i64, scratch_operands = 0 : i64, tpu.core_type = #tpu.core_type<tc>} {
    %c0 = arith.constant 0 : index
    %c0_0 = arith.constant 0 : index
    %0 = vector.load %arg1[%c0, %c0_0] : memref<32x32xbf16, #tpu.memory_space<vmem>>, vector<32x32xbf16>
    %c0_1 = arith.constant 0 : index
    %c0_2 = arith.constant 0 : index
    %1 = vector.load %arg0[%c0_1, %c0_2] : memref<32x16xbf16, #tpu.memory_space<vmem>>, vector<32x16xbf16>
    %c0_3 = arith.constant 0 : index
    %c0_4 = arith.constant 0 : index
    %2 = vector.load %arg2[%c0_3, %c0_4] : memref<16x128xbf16, #tpu.memory_space<vmem>>, vector<16x128xbf16>
    %c0_5 = arith.constant 0 : index
    %c0_6 = arith.constant 0 : index
    %c0_7 = arith.constant 0 : index
    %3 = vector.load %arg4[%c0_5, %c0_6, %c0_7] : memref<3x128x2xbf16, #tpu.memory_space<vmem>>, vector<1x128x2xbf16>
    %4 = vector.shape_cast %3 : vector<1x128x2xbf16> to vector<128x2xbf16>
    %c0_8 = arith.constant 0 : index
    %c0_9 = arith.constant 0 : index
    %c0_10 = arith.constant 0 : index
    %5 = vector.load %arg5[%c0_8, %c0_9, %c0_10] : memref<3x3x128xf32, #tpu.memory_space<vmem>>, vector<1x3x128xf32>
    %6 = vector.shape_cast %5 : vector<1x3x128xf32> to vector<3x128xf32>
    %7 = vector.extract_strided_slice %6 {offsets = [0, 0], sizes = [1, 128], strides = [1, 1]} : vector<3x128xf32> to vector<1x128xf32>
    %8 = vector.extract_strided_slice %6 {offsets = [1, 0], sizes = [1, 128], strides = [1, 1]} : vector<3x128xf32> to vector<1x128xf32>
    %9 = vector.extract_strided_slice %6 {offsets = [2, 0], sizes = [1, 128], strides = [1, 1]} : vector<3x128xf32> to vector<1x128xf32>
    %cst = arith.constant dense<0.000000e+00> : vector<32x128xf32>
    %10 = tpu.matmul %1, %2, %cst {dimension_numbers = #tpu.dot_dimension_numbers<[1], [0], [0], [1], [0, 0, 1, 1], [], []>} : vector<32x16xbf16>, vector<16x128xbf16>, vector<32x128xf32> -> vector<32x128xf32>
    %11 = arith.truncf %10 : vector<32x128xf32> to vector<32x128xbf16>
    %cst_11 = arith.constant dense<0.000000e+00> : vector<32x2xf32>
    %12 = tpu.matmul %11, %4, %cst_11 {dimension_numbers = #tpu.dot_dimension_numbers<[1], [0], [0], [1], [0, 0, 1, 1], [], []>} : vector<32x128xbf16>, vector<128x2xbf16>, vector<32x2xf32> -> vector<32x2xf32>
    %13 = vector.extract_strided_slice %12 {offsets = [0, 0], sizes = [32, 1], strides = [1, 1]} : vector<32x2xf32> to vector<32x1xf32>
    %14 = vector.extract_strided_slice %12 {offsets = [0, 1], sizes = [32, 1], strides = [1, 1]} : vector<32x2xf32> to vector<32x1xf32>
    %15 = tpu.transpose %14, [1, 0] : vector<32x1xf32> -> vector<1x32xf32>
    %16 = vector.broadcast %13 : vector<32x1xf32> to vector<32x32xf32>
    %17 = vector.broadcast %15 : vector<1x32xf32> to vector<32x32xf32>
    %18 = arith.addf %16, %17 : vector<32x32xf32>
    %cst_12 = arith.constant 0.000000e+00 : f32
    %19 = vector.broadcast %cst_12 : f32 to vector<32x32xf32>
    %20 = arith.cmpf ogt, %18, %19 : vector<32x32xf32>
    %cst_13 = arith.constant 2.000000e-01 : f32
    %21 = vector.broadcast %cst_13 : f32 to vector<32x32xf32>
    %22 = arith.mulf %21, %18 : vector<32x32xf32>
    %23 = arith.select %20, %18, %22 : vector<32x32xi1>, vector<32x32xf32>
    %24 = arith.extf %0 : vector<32x32xbf16> to vector<32x32xf32>
    %25 = arith.addf %23, %24 : vector<32x32xf32>
    %cst_14 = arith.constant dense<0xFF800000> : vector<32xf32>
    %26 = vector.multi_reduction <maximumf>, %25, %cst_14 [1] : vector<32x32xf32> to vector<32xf32>
    %27 = vector.shape_cast %26 : vector<32xf32> to vector<32x1xf32>
    %28 = vector.broadcast %27 : vector<32x1xf32> to vector<32x32xf32>
    %29 = arith.subf %25, %28 : vector<32x32xf32>
    %30 = math.exp %29 : vector<32x32xf32>
    %cst_15 = arith.constant dense<0.000000e+00> : vector<32xf32>
    %31 = vector.multi_reduction <add>, %30, %cst_15 [1] : vector<32x32xf32> to vector<32xf32>
    %32 = vector.shape_cast %31 : vector<32xf32> to vector<32x1xf32>
    %33 = arith.truncf %30 : vector<32x32xf32> to vector<32x32xbf16>
    %cst_16 = arith.constant dense<0.000000e+00> : vector<32x128xf32>
    %34 = tpu.matmul %33, %11, %cst_16 {dimension_numbers = #tpu.dot_dimension_numbers<[1], [0], [0], [1], [0, 0, 1, 1], [], []>} : vector<32x32xbf16>, vector<32x128xbf16>, vector<32x128xf32> -> vector<32x128xf32>
    %35 = tpu.reciprocal %32 {approx = true} : vector<32x1xf32> -> vector<32x1xf32>
    %36 = vector.broadcast %35 : vector<32x1xf32> to vector<32x128xf32>
    %37 = arith.mulf %34, %36 : vector<32x128xf32>
    %38 = vector.broadcast %7 : vector<1x128xf32> to vector<32x128xf32>
    %39 = arith.addf %37, %38 : vector<32x128xf32>
    %cst_17 = arith.constant dense<0.000000e+00> : vector<32xf32>
    %40 = vector.multi_reduction <add>, %39, %cst_17 [1] : vector<32x128xf32> to vector<32xf32>
    %41 = vector.shape_cast %40 : vector<32xf32> to vector<32x1xf32>
    %cst_18 = arith.constant 1.280000e+02 : f32
    %42 = vector.broadcast %cst_18 : f32 to vector<32x1xf32>
    %43 = arith.divf %41, %42 : vector<32x1xf32>
    %44 = vector.broadcast %43 : vector<32x1xf32> to vector<32x128xf32>
    %45 = arith.subf %39, %44 : vector<32x128xf32>
    %46 = arith.mulf %45, %45 : vector<32x128xf32>
    %cst_19 = arith.constant dense<0.000000e+00> : vector<32xf32>
    %47 = vector.multi_reduction <add>, %46, %cst_19 [1] : vector<32x128xf32> to vector<32xf32>
    %48 = vector.shape_cast %47 : vector<32xf32> to vector<32x1xf32>
    %cst_20 = arith.constant 1.280000e+02 : f32
    %49 = vector.broadcast %cst_20 : f32 to vector<32x1xf32>
    %50 = arith.divf %48, %49 : vector<32x1xf32>
    %51 = vector.broadcast %43 : vector<32x1xf32> to vector<32x128xf32>
    %52 = arith.subf %39, %51 : vector<32x128xf32>
    %cst_21 = arith.constant 9.99999974E-6 : f32
    %53 = vector.broadcast %cst_21 : f32 to vector<32x1xf32>
    %54 = arith.addf %50, %53 : vector<32x1xf32>
    %55 = math.rsqrt %54 : vector<32x1xf32>
    %56 = vector.broadcast %55 : vector<32x1xf32> to vector<32x128xf32>
    %57 = arith.mulf %52, %56 : vector<32x128xf32>
    %58 = vector.broadcast %8 : vector<1x128xf32> to vector<32x128xf32>
    %59 = arith.mulf %57, %58 : vector<32x128xf32>
    %60 = vector.broadcast %9 : vector<1x128xf32> to vector<32x128xf32>
    %61 = arith.addf %59, %60 : vector<32x128xf32>
    %cst_22 = arith.constant 0.000000e+00 : f32
    %62 = vector.broadcast %cst_22 : f32 to vector<32x128xf32>
    %63 = arith.maximumf %61, %62 : vector<32x128xf32>
    %64 = arith.truncf %63 : vector<32x128xf32> to vector<32x128xbf16>
    %c0_23 = arith.constant 0 : index
    %c0_24 = arith.constant 0 : index
    %c0_25 = arith.constant 0 : index
    %65 = vector.load %arg3[%c0_23, %c0_24, %c0_25] : memref<2x128x128xbf16, #tpu.memory_space<vmem>>, vector<1x128x128xbf16>
    %66 = vector.shape_cast %65 : vector<1x128x128xbf16> to vector<128x128xbf16>
    %c1 = arith.constant 1 : index
    %c0_26 = arith.constant 0 : index
    %c0_27 = arith.constant 0 : index
    %67 = vector.load %arg4[%c1, %c0_26, %c0_27] : memref<3x128x2xbf16, #tpu.memory_space<vmem>>, vector<1x128x2xbf16>
    %68 = vector.shape_cast %67 : vector<1x128x2xbf16> to vector<128x2xbf16>
    %c1_28 = arith.constant 1 : index
    %c0_29 = arith.constant 0 : index
    %c0_30 = arith.constant 0 : index
    %69 = vector.load %arg5[%c1_28, %c0_29, %c0_30] : memref<3x3x128xf32, #tpu.memory_space<vmem>>, vector<1x3x128xf32>
    %70 = vector.shape_cast %69 : vector<1x3x128xf32> to vector<3x128xf32>
    %71 = vector.extract_strided_slice %70 {offsets = [0, 0], sizes = [1, 128], strides = [1, 1]} : vector<3x128xf32> to vector<1x128xf32>
    %72 = vector.extract_strided_slice %70 {offsets = [1, 0], sizes = [1, 128], strides = [1, 1]} : vector<3x128xf32> to vector<1x128xf32>
    %73 = vector.extract_strided_slice %70 {offsets = [2, 0], sizes = [1, 128], strides = [1, 1]} : vector<3x128xf32> to vector<1x128xf32>
    %cst_31 = arith.constant dense<0.000000e+00> : vector<32x128xf32>
    %74 = tpu.matmul %64, %66, %cst_31 {dimension_numbers = #tpu.dot_dimension_numbers<[1], [0], [0], [1], [0, 0, 1, 1], [], []>} : vector<32x128xbf16>, vector<128x128xbf16>, vector<32x128xf32> -> vector<32x128xf32>
    %75 = arith.truncf %74 : vector<32x128xf32> to vector<32x128xbf16>
    %cst_32 = arith.constant dense<0.000000e+00> : vector<32x2xf32>
    %76 = tpu.matmul %75, %68, %cst_32 {dimension_numbers = #tpu.dot_dimension_numbers<[1], [0], [0], [1], [0, 0, 1, 1], [], []>} : vector<32x128xbf16>, vector<128x2xbf16>, vector<32x2xf32> -> vector<32x2xf32>
    %77 = vector.extract_strided_slice %76 {offsets = [0, 0], sizes = [32, 1], strides = [1, 1]} : vector<32x2xf32> to vector<32x1xf32>
    %78 = vector.extract_strided_slice %76 {offsets = [0, 1], sizes = [32, 1], strides = [1, 1]} : vector<32x2xf32> to vector<32x1xf32>
    %79 = tpu.transpose %78, [1, 0] : vector<32x1xf32> -> vector<1x32xf32>
    %80 = vector.broadcast %77 : vector<32x1xf32> to vector<32x32xf32>
    %81 = vector.broadcast %79 : vector<1x32xf32> to vector<32x32xf32>
    %82 = arith.addf %80, %81 : vector<32x32xf32>
    %cst_33 = arith.constant 0.000000e+00 : f32
    %83 = vector.broadcast %cst_33 : f32 to vector<32x32xf32>
    %84 = arith.cmpf ogt, %82, %83 : vector<32x32xf32>
    %cst_34 = arith.constant 2.000000e-01 : f32
    %85 = vector.broadcast %cst_34 : f32 to vector<32x32xf32>
    %86 = arith.mulf %85, %82 : vector<32x32xf32>
    %87 = arith.select %84, %82, %86 : vector<32x32xi1>, vector<32x32xf32>
    %88 = arith.extf %0 : vector<32x32xbf16> to vector<32x32xf32>
    %89 = arith.addf %87, %88 : vector<32x32xf32>
    %cst_35 = arith.constant dense<0xFF800000> : vector<32xf32>
    %90 = vector.multi_reduction <maximumf>, %89, %cst_35 [1] : vector<32x32xf32> to vector<32xf32>
    %91 = vector.shape_cast %90 : vector<32xf32> to vector<32x1xf32>
    %92 = vector.broadcast %91 : vector<32x1xf32> to vector<32x32xf32>
    %93 = arith.subf %89, %92 : vector<32x32xf32>
    %94 = math.exp %93 : vector<32x32xf32>
    %cst_36 = arith.constant dense<0.000000e+00> : vector<32xf32>
    %95 = vector.multi_reduction <add>, %94, %cst_36 [1] : vector<32x32xf32> to vector<32xf32>
    %96 = vector.shape_cast %95 : vector<32xf32> to vector<32x1xf32>
    %97 = arith.truncf %94 : vector<32x32xf32> to vector<32x32xbf16>
    %cst_37 = arith.constant dense<0.000000e+00> : vector<32x128xf32>
    %98 = tpu.matmul %97, %75, %cst_37 {dimension_numbers = #tpu.dot_dimension_numbers<[1], [0], [0], [1], [0, 0, 1, 1], [], []>} : vector<32x32xbf16>, vector<32x128xbf16>, vector<32x128xf32> -> vector<32x128xf32>
    %99 = tpu.reciprocal %96 {approx = true} : vector<32x1xf32> -> vector<32x1xf32>
    %100 = vector.broadcast %99 : vector<32x1xf32> to vector<32x128xf32>
    %101 = arith.mulf %98, %100 : vector<32x128xf32>
    %102 = vector.broadcast %71 : vector<1x128xf32> to vector<32x128xf32>
    %103 = arith.addf %101, %102 : vector<32x128xf32>
    %cst_38 = arith.constant dense<0.000000e+00> : vector<32xf32>
    %104 = vector.multi_reduction <add>, %103, %cst_38 [1] : vector<32x128xf32> to vector<32xf32>
    %105 = vector.shape_cast %104 : vector<32xf32> to vector<32x1xf32>
    %cst_39 = arith.constant 1.280000e+02 : f32
    %106 = vector.broadcast %cst_39 : f32 to vector<32x1xf32>
    %107 = arith.divf %105, %106 : vector<32x1xf32>
    %108 = vector.broadcast %107 : vector<32x1xf32> to vector<32x128xf32>
    %109 = arith.subf %103, %108 : vector<32x128xf32>
    %110 = arith.mulf %109, %109 : vector<32x128xf32>
    %cst_40 = arith.constant dense<0.000000e+00> : vector<32xf32>
    %111 = vector.multi_reduction <add>, %110, %cst_40 [1] : vector<32x128xf32> to vector<32xf32>
    %112 = vector.shape_cast %111 : vector<32xf32> to vector<32x1xf32>
    %cst_41 = arith.constant 1.280000e+02 : f32
    %113 = vector.broadcast %cst_41 : f32 to vector<32x1xf32>
    %114 = arith.divf %112, %113 : vector<32x1xf32>
    %115 = vector.broadcast %107 : vector<32x1xf32> to vector<32x128xf32>
    %116 = arith.subf %103, %115 : vector<32x128xf32>
    %cst_42 = arith.constant 9.99999974E-6 : f32
    %117 = vector.broadcast %cst_42 : f32 to vector<32x1xf32>
    %118 = arith.addf %114, %117 : vector<32x1xf32>
    %119 = math.rsqrt %118 : vector<32x1xf32>
    %120 = vector.broadcast %119 : vector<32x1xf32> to vector<32x128xf32>
    %121 = arith.mulf %116, %120 : vector<32x128xf32>
    %122 = vector.broadcast %72 : vector<1x128xf32> to vector<32x128xf32>
    %123 = arith.mulf %121, %122 : vector<32x128xf32>
    %124 = vector.broadcast %73 : vector<1x128xf32> to vector<32x128xf32>
    %125 = arith.addf %123, %124 : vector<32x128xf32>
    %cst_43 = arith.constant 0.000000e+00 : f32
    %126 = vector.broadcast %cst_43 : f32 to vector<32x128xf32>
    %127 = arith.maximumf %125, %126 : vector<32x128xf32>
    %128 = arith.truncf %127 : vector<32x128xf32> to vector<32x128xbf16>
    %c1_44 = arith.constant 1 : index
    %c0_45 = arith.constant 0 : index
    %c0_46 = arith.constant 0 : index
    %129 = vector.load %arg3[%c1_44, %c0_45, %c0_46] : memref<2x128x128xbf16, #tpu.memory_space<vmem>>, vector<1x128x128xbf16>
    %130 = vector.shape_cast %129 : vector<1x128x128xbf16> to vector<128x128xbf16>
    %c2 = arith.constant 2 : index
    %c0_47 = arith.constant 0 : index
    %c0_48 = arith.constant 0 : index
    %131 = vector.load %arg4[%c2, %c0_47, %c0_48] : memref<3x128x2xbf16, #tpu.memory_space<vmem>>, vector<1x128x2xbf16>
    %132 = vector.shape_cast %131 : vector<1x128x2xbf16> to vector<128x2xbf16>
    %c2_49 = arith.constant 2 : index
    %c0_50 = arith.constant 0 : index
    %c0_51 = arith.constant 0 : index
    %133 = vector.load %arg5[%c2_49, %c0_50, %c0_51] : memref<3x3x128xf32, #tpu.memory_space<vmem>>, vector<1x3x128xf32>
    %134 = vector.shape_cast %133 : vector<1x3x128xf32> to vector<3x128xf32>
    %135 = vector.extract_strided_slice %134 {offsets = [0, 0], sizes = [1, 128], strides = [1, 1]} : vector<3x128xf32> to vector<1x128xf32>
    %136 = vector.extract_strided_slice %134 {offsets = [1, 0], sizes = [1, 128], strides = [1, 1]} : vector<3x128xf32> to vector<1x128xf32>
    %137 = vector.extract_strided_slice %134 {offsets = [2, 0], sizes = [1, 128], strides = [1, 1]} : vector<3x128xf32> to vector<1x128xf32>
    %cst_52 = arith.constant dense<0.000000e+00> : vector<32x128xf32>
    %138 = tpu.matmul %128, %130, %cst_52 {dimension_numbers = #tpu.dot_dimension_numbers<[1], [0], [0], [1], [0, 0, 1, 1], [], []>} : vector<32x128xbf16>, vector<128x128xbf16>, vector<32x128xf32> -> vector<32x128xf32>
    %139 = arith.truncf %138 : vector<32x128xf32> to vector<32x128xbf16>
    %cst_53 = arith.constant dense<0.000000e+00> : vector<32x2xf32>
    %140 = tpu.matmul %139, %132, %cst_53 {dimension_numbers = #tpu.dot_dimension_numbers<[1], [0], [0], [1], [0, 0, 1, 1], [], []>} : vector<32x128xbf16>, vector<128x2xbf16>, vector<32x2xf32> -> vector<32x2xf32>
    %141 = vector.extract_strided_slice %140 {offsets = [0, 0], sizes = [32, 1], strides = [1, 1]} : vector<32x2xf32> to vector<32x1xf32>
    %142 = vector.extract_strided_slice %140 {offsets = [0, 1], sizes = [32, 1], strides = [1, 1]} : vector<32x2xf32> to vector<32x1xf32>
    %143 = tpu.transpose %142, [1, 0] : vector<32x1xf32> -> vector<1x32xf32>
    %144 = vector.broadcast %141 : vector<32x1xf32> to vector<32x32xf32>
    %145 = vector.broadcast %143 : vector<1x32xf32> to vector<32x32xf32>
    %146 = arith.addf %144, %145 : vector<32x32xf32>
    %cst_54 = arith.constant 0.000000e+00 : f32
    %147 = vector.broadcast %cst_54 : f32 to vector<32x32xf32>
    %148 = arith.cmpf ogt, %146, %147 : vector<32x32xf32>
    %cst_55 = arith.constant 2.000000e-01 : f32
    %149 = vector.broadcast %cst_55 : f32 to vector<32x32xf32>
    %150 = arith.mulf %149, %146 : vector<32x32xf32>
    %151 = arith.select %148, %146, %150 : vector<32x32xi1>, vector<32x32xf32>
    %152 = arith.extf %0 : vector<32x32xbf16> to vector<32x32xf32>
    %153 = arith.addf %151, %152 : vector<32x32xf32>
    %cst_56 = arith.constant dense<0xFF800000> : vector<32xf32>
    %154 = vector.multi_reduction <maximumf>, %153, %cst_56 [1] : vector<32x32xf32> to vector<32xf32>
    %155 = vector.shape_cast %154 : vector<32xf32> to vector<32x1xf32>
    %156 = vector.broadcast %155 : vector<32x1xf32> to vector<32x32xf32>
    %157 = arith.subf %153, %156 : vector<32x32xf32>
    %158 = math.exp %157 : vector<32x32xf32>
    %cst_57 = arith.constant dense<0.000000e+00> : vector<32xf32>
    %159 = vector.multi_reduction <add>, %158, %cst_57 [1] : vector<32x32xf32> to vector<32xf32>
    %160 = vector.shape_cast %159 : vector<32xf32> to vector<32x1xf32>
    %161 = arith.truncf %158 : vector<32x32xf32> to vector<32x32xbf16>
    %cst_58 = arith.constant dense<0.000000e+00> : vector<32x128xf32>
    %162 = tpu.matmul %161, %139, %cst_58 {dimension_numbers = #tpu.dot_dimension_numbers<[1], [0], [0], [1], [0, 0, 1, 1], [], []>} : vector<32x32xbf16>, vector<32x128xbf16>, vector<32x128xf32> -> vector<32x128xf32>
    %163 = tpu.reciprocal %160 {approx = true} : vector<32x1xf32> -> vector<32x1xf32>
    %164 = vector.broadcast %163 : vector<32x1xf32> to vector<32x128xf32>
    %165 = arith.mulf %162, %164 : vector<32x128xf32>
    %166 = vector.broadcast %135 : vector<1x128xf32> to vector<32x128xf32>
    %167 = arith.addf %165, %166 : vector<32x128xf32>
    %cst_59 = arith.constant dense<0.000000e+00> : vector<32xf32>
    %168 = vector.multi_reduction <add>, %167, %cst_59 [1] : vector<32x128xf32> to vector<32xf32>
    %169 = vector.shape_cast %168 : vector<32xf32> to vector<32x1xf32>
    %cst_60 = arith.constant 1.280000e+02 : f32
    %170 = vector.broadcast %cst_60 : f32 to vector<32x1xf32>
    %171 = arith.divf %169, %170 : vector<32x1xf32>
    %172 = vector.broadcast %171 : vector<32x1xf32> to vector<32x128xf32>
    %173 = arith.subf %167, %172 : vector<32x128xf32>
    %174 = arith.mulf %173, %173 : vector<32x128xf32>
    %cst_61 = arith.constant dense<0.000000e+00> : vector<32xf32>
    %175 = vector.multi_reduction <add>, %174, %cst_61 [1] : vector<32x128xf32> to vector<32xf32>
    %176 = vector.shape_cast %175 : vector<32xf32> to vector<32x1xf32>
    %cst_62 = arith.constant 1.280000e+02 : f32
    %177 = vector.broadcast %cst_62 : f32 to vector<32x1xf32>
    %178 = arith.divf %176, %177 : vector<32x1xf32>
    %179 = vector.broadcast %171 : vector<32x1xf32> to vector<32x128xf32>
    %180 = arith.subf %167, %179 : vector<32x128xf32>
    %cst_63 = arith.constant 9.99999974E-6 : f32
    %181 = vector.broadcast %cst_63 : f32 to vector<32x1xf32>
    %182 = arith.addf %178, %181 : vector<32x1xf32>
    %183 = math.rsqrt %182 : vector<32x1xf32>
    %184 = vector.broadcast %183 : vector<32x1xf32> to vector<32x128xf32>
    %185 = arith.mulf %180, %184 : vector<32x128xf32>
    %186 = vector.broadcast %136 : vector<1x128xf32> to vector<32x128xf32>
    %187 = arith.mulf %185, %186 : vector<32x128xf32>
    %188 = vector.broadcast %137 : vector<1x128xf32> to vector<32x128xf32>
    %189 = arith.addf %187, %188 : vector<32x128xf32>
    %cst_64 = arith.constant 0.000000e+00 : f32
    %190 = vector.broadcast %cst_64 : f32 to vector<32x128xf32>
    %191 = arith.maximumf %189, %190 : vector<32x128xf32>
    %c0_65 = arith.constant 0 : index
    %c0_66 = arith.constant 0 : index
    %192 = vector.load %arg6[%c0_65, %c0_66] : memref<2x32xbf16, #tpu.memory_space<vmem>>, vector<2x32xbf16>
    %193 = arith.truncf %191 : vector<32x128xf32> to vector<32x128xbf16>
    %cst_67 = arith.constant dense<0.000000e+00> : vector<2x128xf32>
    %194 = tpu.matmul %192, %193, %cst_67 {dimension_numbers = #tpu.dot_dimension_numbers<[1], [0], [0], [1], [0, 0, 1, 1], [], []>} : vector<2x32xbf16>, vector<32x128xbf16>, vector<2x128xf32> -> vector<2x128xf32>
    %c0_68 = arith.constant 0 : index
    %c0_69 = arith.constant 0 : index
    %195 = vector.load %arg7[%c0_68, %c0_69] : memref<2x1xf32, #tpu.memory_space<vmem>>, vector<2x1xf32>
    %196 = vector.broadcast %195 : vector<2x1xf32> to vector<2x128xf32>
    %197 = arith.mulf %194, %196 : vector<2x128xf32>
    %c0_70 = arith.constant 0 : index
    %c0_71 = arith.constant 0 : index
    %198 = vector.load %arg9[%c0_70, %c0_71] : memref<132x128xf32, #tpu.memory_space<vmem>>, vector<128x128xf32>
    %cst_72 = arith.constant dense<0.000000e+00> : vector<2x128xf32>
    %199 = tpu.matmul %197, %198, %cst_72 {dimension_numbers = #tpu.dot_dimension_numbers<[1], [0], [0], [1], [0, 0, 1, 1], [], []>} : vector<2x128xf32>, vector<128x128xf32>, vector<2x128xf32> -> vector<2x128xf32>
    %c0_73 = arith.constant 0 : index
    %c0_74 = arith.constant 0 : index
    %200 = vector.load %arg8[%c0_73, %c0_74] : memref<2x4xf32, #tpu.memory_space<vmem>>, vector<2x4xf32>
    %c128 = arith.constant 128 : index
    %c0_75 = arith.constant 0 : index
    %201 = vector.load %arg9[%c128, %c0_75] : memref<132x128xf32, #tpu.memory_space<vmem>>, vector<4x128xf32>
    %cst_76 = arith.constant dense<0.000000e+00> : vector<2x128xf32>
    %202 = tpu.matmul %200, %201, %cst_76 {dimension_numbers = #tpu.dot_dimension_numbers<[1], [0], [0], [1], [0, 0, 1, 1], [], []>} : vector<2x4xf32>, vector<4x128xf32>, vector<2x128xf32> -> vector<2x128xf32>
    %203 = arith.addf %199, %202 : vector<2x128xf32>
    %c0_77 = arith.constant 0 : index
    %c0_78 = arith.constant 0 : index
    %204 = vector.load %arg10[%c0_77, %c0_78] : memref<1x128xf32, #tpu.memory_space<vmem>>, vector<1x128xf32>
    %205 = vector.broadcast %204 : vector<1x128xf32> to vector<2x128xf32>
    %206 = arith.addf %203, %205 : vector<2x128xf32>
    %cst_79 = arith.constant 0.000000e+00 : f32
    %207 = vector.broadcast %cst_79 : f32 to vector<2x128xf32>
    %208 = arith.maximumf %206, %207 : vector<2x128xf32>
    %c0_80 = arith.constant 0 : index
    %c0_81 = arith.constant 0 : index
    %209 = vector.load %arg11[%c0_80, %c0_81] : memref<128x8xf32, #tpu.memory_space<vmem>>, vector<128x8xf32>
    %cst_82 = arith.constant dense<0.000000e+00> : vector<2x8xf32>
    %210 = tpu.matmul %208, %209, %cst_82 {dimension_numbers = #tpu.dot_dimension_numbers<[1], [0], [0], [1], [0, 0, 1, 1], [], []>} : vector<2x128xf32>, vector<128x8xf32>, vector<2x8xf32> -> vector<2x8xf32>
    %c0_83 = arith.constant 0 : index
    %c0_84 = arith.constant 0 : index
    %211 = vector.load %arg12[%c0_83, %c0_84] : memref<1x8xf32, #tpu.memory_space<vmem>>, vector<1x8xf32>
    %212 = vector.broadcast %211 : vector<1x8xf32> to vector<2x8xf32>
    %213 = arith.addf %210, %212 : vector<2x8xf32>
    %c0_85 = arith.constant 0 : index
    %c0_86 = arith.constant 0 : index
    %214 = vector.load %arg13[%c0_85, %c0_86] : memref<2x8xf32, #tpu.memory_space<vmem>>, vector<2x8xf32>
    tpu.vector_store %arg13[%c0_85, %c0_86], %213 {strides = array<i32>} : memref<2x8xf32, #tpu.memory_space<vmem>>, vector<2x8xf32>,
    return
  }
}

</mosaic_0001>

<bundles_post_ra>
// kernel: gat_model_forward.1
= control target key start
LH: loop header
LB: loop body
LE: loop exit
PB: predicated region body
PF: predicated region fallthrough
CT: control target
= control target key end

     0   :  { %18 = vsyncpa [#allocation3], 0  ;;  %s3358_s0 = inlined_call_operand.hbm [shape: bf16[32,16], index: 0, kind: input, shape index: {}]   ;;  %s3359_s1 = inlined_call_operand.hbm [shape: bf16[32,32], index: 1, kind: input, shape index: {}]   ;;  %s3360_s2 = inlined_call_operand.hbm [shape: bf16[16,128], index: 2, kind: input, shape index: {}]   ;;  %s3361_s3 = inlined_call_operand.hbm [shape: bf16[2,128,128], index: 3, kind: input, shape index: {}]   ;;  %s3362_s4 = inlined_call_operand.hbm [shape: bf16[3,128,2], index: 4, kind: input, shape index: {}]   ;;  %s3363_s5 = inlined_call_operand.hbm [shape: f32[3,3,128], index: 5, kind: input, shape index: {}]   ;;  %s3364_s6 = inlined_call_operand.hbm [shape: bf16[2,32], index: 6, kind: input, shape index: {}]   ;;  %s3365_s7 = inlined_call_operand.hbm [shape: f32[2,1], index: 7, kind: input, shape index: {}]   ;;  %s3366_s8 = inlined_call_operand.hbm [shape: f32[2,4], index: 8, kind: input, shape index: {}]   ;;  %s3367_s9 = inlined_call_operand.hbm [shape: f32[132,128], index: 9, kind: input, shape index: {}]   ;;  %s3368_s10 = inlined_call_operand.hbm [shape: f32[1,128], index: 10, kind: input, shape index: {}]   ;;  %s3369_s11 = inlined_call_operand.hbm [shape: f32[128,8], index: 11, kind: input, shape index: {}]   ;;  %s3370_s12 = inlined_call_operand.hbm [shape: f32[1,8], index: 12, kind: input, shape index: {}]   ;;  %s3371_s13 = inlined_call_operand.hbm [shape: f32[2,8], index: 13, kind: output, shape index: {}]  }
   0x1   :  { %19 = vsyncpa [#allocation6], 0 }
   0x2   :  { %20 = vsyncpa [#allocation9], 0 }
   0x3   :  { %21 = vsyncpa [#allocation12], 0 }
   0x4   :  { %22 = vsyncpa [#allocation15], 0 }
   0x5   :  { %23 = vsyncpa [#allocation18], 0 }
   0x6   :  { %24 = vsyncpa [#allocation21], 0 }
   0x7   :  { %25 = vsyncpa [#allocation4], 0  ;;  %s2904_s25 = smov [#allocation5]   ;;  %s2905_s27 = smov [#allocation8]  }
   0x8   :  { %s43_s26 = sshll.u32 %s2904_s25, 4  ;;  %s67_s28 = sshll.u32 %s2905_s27, 4  ;;  %s44_s26 = int_to_ptr.vmem [resolvable:$true] %s43_s26  ;;  %s2997_s28 = int_to_ptr.vmem [resolvable:$true] %s67_s28 }
   0x9   :  { %s2580_s14 = scalar_lea.hbm %s3359_s1, 256 }
   0xa   :  { %p2581_p0 = scmp.ne.s32.totalorder %s3359_s1, %s2580_s14  ;;  %p2584_p1 = scmp.lt.u32.totalorder %s2580_s14, %s3359_s1 }
   0xc   :  { %p2586_p2 = pnand %p2584_p1, %p2581_p0 }
   0xe   :  { %2589 = shalt.err (!%p2586_p2)
}
   0xf   :  { %s2590_s19 = scalar_lea.vmem %s44_s26, 256  ;;  %p2595_p4 = scmp.lt.s32.totalorder %s44_s26, %s44_s26 }
  0x10   :  { %p2591_p3 = scmp.ne.s32.totalorder %s44_s26, %s2590_s19  ;;  %p2596_p5 = scmp.lt.s32.totalorder %s2590_s19, %s2590_s19 }
  0x12   :  { %p2597_p6 = por %p2596_p5, %p2595_p4 }
  0x14   :  { %p2598_p7 = pnand %p2597_p6, %p2591_p3 }
  0x16   :  { %2601 = shalt.err (!%p2598_p7)
}
  0x17   :  { %s2906_s20 = smov 64   ;;  %s2907_s21 = smov 4  }
  0x18   :  { %49 = dma.hbm_to_vmem [thread:$0]  %s3359_s1, 256, %s44_s26, [#allocation6], %s2906_s20, %s2906_s20, %s2907_s21  }
  0x19   :  { %s2602_s27 = scalar_lea.hbm %s3361_s3, 2048 }
  0x1a   :  { %p2603_p8 = scmp.ne.s32.totalorder %s3361_s3, %s2602_s27  ;;  %p2606_p9 = scmp.lt.u32.totalorder %s2602_s27, %s3361_s3 }
  0x1c   :  { %p2608_p10 = pnand %p2606_p9, %p2603_p8 }
  0x1e   :  { %2611 = shalt.err (!%p2608_p10)
}
  0x1f   :  { %s2612_s16 = scalar_lea.vmem %s2997_s28, 2048  ;;  %p2617_p12 = scmp.lt.s32.totalorder %s2997_s28, %s2997_s28 }
  0x20   :  { %p2613_p11 = scmp.ne.s32.totalorder %s2997_s28, %s2612_s16  ;;  %p2618_p13 = scmp.lt.s32.totalorder %s2612_s16, %s2612_s16 }
  0x22   :  { %p2619_p0 = por %p2618_p13, %p2617_p12 }
  0x24   :  { %p2620_p1 = pnand %p2619_p0, %p2613_p11 }
  0x26   :  { %2623 = shalt.err (!%p2620_p1)
}
  0x27   :  { %73 = dma.hbm_to_vmem [thread:$0]  %s3361_s3, 2048, %s2997_s28, [#allocation9], %s2906_s20, %s2906_s20, %s2907_s21  }
  0x28   :  { %s2908_s17 = smov [#allocation11]   ;;  %s2909_s19 = smov [#allocation14]  }
  0x29   :  { %s91_s18 = sshll.u32 %s2908_s17, 4  ;;  %s114_s22 = sshll.u32 %s2909_s19, 4  ;;  %s92_s18 = int_to_ptr.vmem [resolvable:$true] %s91_s18  ;;  %s115_s22 = int_to_ptr.vmem [resolvable:$true] %s114_s22 }
  0x2a   :  { %s2624_s25 = scalar_lea.hbm %s3363_s5, 192 }
  0x2b   :  { %p2625_p2 = scmp.ne.s32.totalorder %s3363_s5, %s2624_s25  ;;  %p2628_p3 = scmp.lt.u32.totalorder %s2624_s25, %s3363_s5 }
  0x2d   :  { %p2630_p4 = pnand %p2628_p3, %p2625_p2 }
  0x2f   :  { %2633 = shalt.err (!%p2630_p4)
}
  0x30   :  { %s2634_s3 = scalar_lea.vmem %s92_s18, 192  ;;  %p2639_p6 = scmp.lt.s32.totalorder %s92_s18, %s92_s18 }
  0x31   :  { %p2635_p5 = scmp.ne.s32.totalorder %s92_s18, %s2634_s3  ;;  %p2640_p7 = scmp.lt.s32.totalorder %s2634_s3, %s2634_s3 }
  0x33   :  { %p2641_p8 = por %p2640_p7, %p2639_p6 }
  0x35   :  { %p2642_p9 = pnand %p2641_p8, %p2635_p5 }
  0x37   :  { %2645 = shalt.err (!%p2642_p9)
}
  0x38   :  { %97 = dma.hbm_to_vmem [thread:$0]  %s3363_s5, 192, %s92_s18, [#allocation12], %s2906_s20, %s2906_s20, %s2907_s21  }
  0x39   :  { %s2646_s26 = scalar_lea.hbm %s3365_s7, 32 }
  0x3a   :  { %p2647_p10 = scmp.ne.s32.totalorder %s3365_s7, %s2646_s26  ;;  %p2650_p11 = scmp.lt.u32.totalorder %s2646_s26, %s3365_s7 }
  0x3c   :  { %p2652_p12 = pnand %p2650_p11, %p2647_p10 }
  0x3e   :  { %2655 = shalt.err (!%p2652_p12)
}
  0x3f   :  { %s2656_s25 = scalar_lea.vmem %s115_s22, 32  ;;  %p2661_p0 = scmp.lt.s32.totalorder %s115_s22, %s115_s22 }
  0x40   :  { %p2657_p13 = scmp.ne.s32.totalorder %s115_s22, %s2656_s25  ;;  %p2662_p1 = scmp.lt.s32.totalorder %s2656_s25, %s2656_s25 }
  0x42   :  { %p2663_p2 = por %p2662_p1, %p2661_p0 }
  0x44   :  { %p2664_p3 = pnand %p2663_p2, %p2657_p13 }
  0x46   :  { %2667 = shalt.err (!%p2664_p3)
}
  0x47   :  { %117 = dma.hbm_to_vmem [thread:$0]  %s3365_s7, 32, %s115_s22, [#allocation15]  }
  0x48   :  { %s2910_s27 = smov [#allocation17]   ;;  %s2668_s3 = scalar_lea.hbm %s3367_s9, 2176 }
  0x49   :  { %s133_s29 = sshll.u32 %s2910_s27, 4  ;;  %p2669_p4 = scmp.ne.s32.totalorder %s3367_s9, %s2668_s3  ;;  %s134_s29 = int_to_ptr.vmem [resolvable:$true] %s133_s29 }
  0x4a   :  { %p2672_p5 = scmp.lt.u32.totalorder %s2668_s3, %s3367_s9 }
  0x4c   :  { %p2674_p6 = pnand %p2672_p5, %p2669_p4 }
  0x4e   :  { %2677 = shalt.err (!%p2674_p6)
}
  0x4f   :  { %s2678_s26 = scalar_lea.vmem %s134_s29, 2176  ;;  %p2683_p8 = scmp.lt.s32.totalorder %s134_s29, %s134_s29 }
  0x50   :  { %p2679_p7 = scmp.ne.s32.totalorder %s134_s29, %s2678_s26  ;;  %p2684_p9 = scmp.lt.s32.totalorder %s2678_s26, %s2678_s26 }
  0x52   :  { %p2685_p10 = por %p2684_p9, %p2683_p8 }
  0x54   :  { %p2686_p11 = pnand %p2685_p10, %p2679_p7 }
  0x56   :  { %2689 = shalt.err (!%p2686_p11)
}
  0x57   :  { %s2911_s7 = smov 128   ;;  %s2912_s22 = smov 8  }
  0x58   :  { %139 = dma.hbm_to_vmem [thread:$0]  %s3367_s9, 2176, %s134_s29, [#allocation18], %s2911_s7, %s2911_s7, %s2912_s22  }
  0x59   :  { %s2913_s23 = smov [#allocation20]   ;;  %s2914_s25 = smov [#allocation2]  }
  0x5a   :  { %s155_s24 = sshll.u32 %s2913_s23, 4  ;;  %s31_s5 = sshll.u32 %s2914_s25, 4  ;;  %s156_s24 = int_to_ptr.vmem [resolvable:$true] %s155_s24  ;;  %s32_s5 = int_to_ptr.vmem [resolvable:$true] %s31_s5 }
  0x5b   :  { %s2690_s30 = scalar_lea.hbm %s3369_s11, 2048 }
  0x5c   :  { %p2691_p12 = scmp.ne.s32.totalorder %s3369_s11, %s2690_s30  ;;  %p2694_p13 = scmp.lt.u32.totalorder %s2690_s30, %s3369_s11 }
  0x5e   :  { %p2696_p0 = pnand %p2694_p13, %p2691_p12 }
  0x60   :  { %2699 = shalt.err (!%p2696_p0)
}
  0x61   :  { %s2700_s9 = scalar_lea.vmem %s156_s24, 2048  ;;  %p2705_p2 = scmp.lt.s32.totalorder %s156_s24, %s156_s24 }
  0x62   :  { %p2701_p1 = scmp.ne.s32.totalorder %s156_s24, %s2700_s9  ;;  %p2706_p3 = scmp.lt.s32.totalorder %s2700_s9, %s2700_s9 }
  0x64   :  { %p2707_p4 = por %p2706_p3, %p2705_p2 }
  0x66   :  { %p2708_p5 = pnand %p2707_p4, %p2701_p1 }
  0x68   :  { %2711 = shalt.err (!%p2708_p5)
}
  0x69   :  { %161 = dma.hbm_to_vmem [thread:$0]  %s3369_s11, 2048, %s156_s24, [#allocation21], %s2911_s7, %s2911_s7, %s2912_s22  }
  0x6a   :  { %s2712_s17 = scalar_lea.hbm %s3358_s0, 256 }
  0x6b   :  { %p2713_p6 = scmp.ne.s32.totalorder %s3358_s0, %s2712_s17  ;;  %p2716_p7 = scmp.lt.u32.totalorder %s2712_s17, %s3358_s0 }
  0x6d   :  { %p2718_p8 = pnand %p2716_p7, %p2713_p6 }
  0x6f   :  { %2721 = shalt.err (!%p2718_p8)
}
  0x70   :  { %s2722_s27 = scalar_lea.vmem %s32_s5, 256  ;;  %p2727_p10 = scmp.lt.s32.totalorder %s32_s5, %s32_s5 }
  0x71   :  { %p2723_p9 = scmp.ne.s32.totalorder %s32_s5, %s2722_s27  ;;  %p2728_p11 = scmp.lt.s32.totalorder %s2722_s27, %s2722_s27 }
  0x73   :  { %p2729_p12 = por %p2728_p11, %p2727_p10 }
  0x75   :  { %p2730_p13 = pnand %p2729_p12, %p2723_p9 }
  0x77   :  { %2733 = shalt.err (!%p2730_p13)
}
  0x78   :  { %37 = dma.hbm_to_vmem [thread:$0]  %s3358_s0, 256, %s32_s5, [#allocation3], %s2906_s20, %s2906_s20, %s2907_s21  }
  0x79   :  { %s2915_s22 = smov [#allocation7]   ;;  %s2916_s30 = smov [#allocation10]  }
  0x7a   :  { %s55_s24 = sshll.u32 %s2915_s22, 4  ;;  %s79_s14 = sshll.u32 %s2916_s30, 4  ;;  %s56_s24 = int_to_ptr.vmem [resolvable:$true] %s55_s24  ;;  %s80_s14 = int_to_ptr.vmem [resolvable:$true] %s79_s14 }
  0x7b   :  { %s2734_s15 = scalar_lea.hbm %s3360_s2, 128 }
  0x7c   :  { %p2735_p0 = scmp.ne.s32.totalorder %s3360_s2, %s2734_s15  ;;  %p2738_p1 = scmp.lt.u32.totalorder %s2734_s15, %s3360_s2 }
  0x7e   :  { %p2740_p2 = pnand %p2738_p1, %p2735_p0 }
  0x80   :  { %2743 = shalt.err (!%p2740_p2)
}
  0x81   :  { %s2744_s0 = scalar_lea.vmem %s56_s24, 128  ;;  %p2749_p4 = scmp.lt.s32.totalorder %s56_s24, %s56_s24 }
  0x82   :  { %p2745_p3 = scmp.ne.s32.totalorder %s56_s24, %s2744_s0  ;;  %p2750_p5 = scmp.lt.s32.totalorder %s2744_s0, %s2744_s0 }
  0x84   :  { %p2751_p6 = por %p2750_p5, %p2749_p4 }
  0x86   :  { %p2752_p7 = pnand %p2751_p6, %p2745_p3 }
  0x88   :  { %2755 = shalt.err (!%p2752_p7)
}
  0x89   :  { %61 = dma.hbm_to_vmem [thread:$0]  %s3360_s2, 128, %s56_s24, [#allocation6], %s2906_s20, %s2906_s20, %s2907_s21  }
  0x8a   :  { %s2756_s23 = scalar_lea.hbm %s3362_s4, 3072 }
  0x8b   :  { %p2757_p8 = scmp.ne.s32.totalorder %s3362_s4, %s2756_s23  ;;  %p2760_p9 = scmp.lt.u32.totalorder %s2756_s23, %s3362_s4 }
  0x8d   :  { %p2762_p10 = pnand %p2760_p9, %p2757_p8 }
  0x8f   :  { %2765 = shalt.err (!%p2762_p10)
}
  0x90   :  { %s2766_s7 = scalar_lea.vmem %s80_s14, 3072  ;;  %p2771_p12 = scmp.lt.s32.totalorder %s80_s14, %s80_s14 }
  0x91   :  { %p2767_p11 = scmp.ne.s32.totalorder %s80_s14, %s2766_s7  ;;  %p2772_p13 = scmp.lt.s32.totalorder %s2766_s7, %s2766_s7 }
  0x93   :  { %p2773_p0 = por %p2772_p13, %p2771_p12 }
  0x95   :  { %p2774_p1 = pnand %p2773_p0, %p2767_p11 }
  0x97   :  { %2777 = shalt.err (!%p2774_p1)
}
  0x98   :  { %85 = dma.hbm_to_vmem [thread:$0]  %s3362_s4, 3072, %s80_s14, [#allocation9], %s2906_s20, %s2906_s20, %s2907_s21  }
  0x99   :  { %s2917_s24 = smov [#allocation13]   ;;  %s2918_s3 = smov [#allocation16]  }
  0x9a   :  { %s104_s30 = sshll.u32 %s2917_s24, 4  ;;  %s124_s28 = sshll.u32 %s2918_s3, 4  ;;  %s105_s30 = int_to_ptr.vmem [resolvable:$true] %s104_s30  ;;  %s125_s28 = int_to_ptr.vmem [resolvable:$true] %s124_s28 }
  0x9b   :  { %s2778_s29 = scalar_lea.hbm %s3364_s6, 16 }
  0x9c   :  { %p2779_p2 = scmp.ne.s32.totalorder %s3364_s6, %s2778_s29  ;;  %p2782_p3 = scmp.lt.u32.totalorder %s2778_s29, %s3364_s6 }
  0x9e   :  { %p2784_p4 = pnand %p2782_p3, %p2779_p2 }
  0xa0   :  { %2787 = shalt.err (!%p2784_p4)
}
  0xa1   :  { %s2788_s4 = scalar_lea.vmem %s105_s30, 16  ;;  %s2792_s20 = scalar_lea.vmem %s105_s30, 32 }
  0xa2   :  { %p2789_p5 = scmp.ne.s32.totalorder %s105_s30, %s2788_s4  ;;  %p2793_p6 = scmp.lt.s32.totalorder %s105_s30, %s105_s30 }
  0xa3   :  { %p2794_p7 = scmp.lt.s32.totalorder %s2792_s20, %s2788_s4 }
  0xa5   :  { %p2795_p8 = por %p2794_p7, %p2793_p6 }
  0xa7   :  { %p2796_p9 = pnand %p2795_p8, %p2789_p5 }
  0xa9   :  { %2799 = shalt.err (!%p2796_p9)
}
  0xaa   :  { %107 = dma.hbm_to_vmem [thread:$0]  %s3364_s6, 16, %s105_s30, [#allocation12]  }
  0xab   :  { %s2800_s19 = scalar_lea.hbm %s3366_s8, 32 }
  0xac   :  { %p2801_p10 = scmp.ne.s32.totalorder %s3366_s8, %s2800_s19  ;;  %p2804_p11 = scmp.lt.u32.totalorder %s2800_s19, %s3366_s8 }
  0xae   :  { %p2806_p12 = pnand %p2804_p11, %p2801_p10 }
  0xb0   :  { %2809 = shalt.err (!%p2806_p12)
}
  0xb1   :  { %s2810_s11 = scalar_lea.vmem %s125_s28, 32  ;;  %p2815_p0 = scmp.lt.s32.totalorder %s125_s28, %s125_s28 }
  0xb2   :  { %p2811_p13 = scmp.ne.s32.totalorder %s125_s28, %s2810_s11  ;;  %p2816_p1 = scmp.lt.s32.totalorder %s2810_s11, %s2810_s11 }
  0xb4   :  { %p2817_p2 = por %p2816_p1, %p2815_p0 }
  0xb6   :  { %p2818_p3 = pnand %p2817_p2, %p2811_p13 }
  0xb8   :  { %2821 = shalt.err (!%p2818_p3)
}
  0xb9   :  { %127 = dma.hbm_to_vmem [thread:$0]  %s3366_s8, 32, %s125_s28, [#allocation15]  }
  0xba   :  { %s2919_s2 = smov [#allocation19]   ;;  %s2920_s24 = smov [#allocation22]  }
  0xbb   :  { %s146_s22 = sshll.u32 %s2919_s2, 4  ;;  %s168_s30 = sshll.u32 %s2920_s24, 4  ;;  %s147_s22 = int_to_ptr.vmem [resolvable:$true] %s146_s22  ;;  %s169_s30 = int_to_ptr.vmem [resolvable:$true] %s168_s30 }
  0xbc   :  { %s2822_s9 = scalar_lea.hbm %s3368_s10, 16 }
  0xbd   :  { %p2823_p4 = scmp.ne.s32.totalorder %s3368_s10, %s2822_s9  ;;  %p2826_p5 = scmp.lt.u32.totalorder %s2822_s9, %s3368_s10 }
  0xbf   :  { %p2828_p6 = pnand %p2826_p5, %p2823_p4 }
  0xc1   :  { %2831 = shalt.err (!%p2828_p6)
}
  0xc2   :  { %s2832_s8 = scalar_lea.vmem %s147_s22, 16  ;;  %s2836_s28 = scalar_lea.vmem %s147_s22, 32 }
  0xc3   :  { %p2833_p7 = scmp.ne.s32.totalorder %s147_s22, %s2832_s8  ;;  %p2837_p8 = scmp.lt.s32.totalorder %s147_s22, %s147_s22 }
  0xc4   :  { %p2838_p9 = scmp.lt.s32.totalorder %s2836_s28, %s2832_s8 }
  0xc6   :  { %p2839_p10 = por %p2838_p9, %p2837_p8 }
  0xc8   :  { %p2840_p11 = pnand %p2839_p10, %p2833_p7 }
  0xca   :  { %2843 = shalt.err (!%p2840_p11)
}
  0xcb   :  { %149 = dma.hbm_to_vmem [thread:$0]  %s3368_s10, 16, %s147_s22, [#allocation18]  }
  0xcc   :  { %s2844_s14 = scalar_lea.hbm %s3370_s12, 16 }
  0xcd   :  { %p2845_p12 = scmp.ne.s32.totalorder %s3370_s12, %s2844_s14  ;;  %p2848_p13 = scmp.lt.u32.totalorder %s2844_s14, %s3370_s12 }
  0xcf   :  { %p2850_p0 = pnand %p2848_p13, %p2845_p12 }
  0xd1   :  { %2853 = shalt.err (!%p2850_p0)
}
  0xd2   :  { %s2854_s25 = scalar_lea.vmem %s169_s30, 16  ;;  %s2858_s18 = scalar_lea.vmem %s169_s30, 32 }
  0xd3   :  { %p2855_p1 = scmp.ne.s32.totalorder %s169_s30, %s2854_s25  ;;  %p2859_p2 = scmp.lt.s32.totalorder %s169_s30, %s169_s30 }
  0xd4   :  { %p2860_p3 = scmp.lt.s32.totalorder %s2858_s18, %s2854_s25 }
  0xd6   :  { %p2861_p4 = por %p2860_p3, %p2859_p2 }
  0xd8   :  { %p2862_p5 = pnand %p2861_p4, %p2855_p1 }
  0xda   :  { %2865 = shalt.err (!%p2862_p5)
}
  0xdb   :  { %171 = dma.hbm_to_vmem [thread:$0]  %s3370_s12, 16, %s169_s30, [#allocation21]  }
  0xdc   :  { %2888 = dma.done.wait [#allocation3], 256  }
  0xdd   :  { %2889 = vsyncadd [#allocation3], 4294967040 }
  0xde   :  { %2890 = dma.done.wait [#allocation6], 384  }
  0xdf   :  { %2891 = vsyncadd [#allocation6], 4294966912 }
  0xe0   :  { %2892 = dma.done.wait [#allocation9], 5120  }
  0xe1   :  { %2893 = vsyncadd [#allocation9], 4294962176 }
  0xe2   :  { %2894 = dma.done.wait [#allocation12], 208  }
  0xe3   :  { %2895 = vsyncadd [#allocation12], 4294967088 }
  0xe4   :  { %2896 = dma.done.wait [#allocation15], 64  }
  0xe5   :  { %2897 = vsyncadd [#allocation15], 4294967232 }
  0xe6   :  { %2898 = dma.done.wait [#allocation18], 2192  }
  0xe7   :  { %2899 = vsyncadd [#allocation18], 4294965104 }
  0xe8   :  { %2900 = dma.done.wait [#allocation21], 2064  }
  0xe9   :  { %2901 = vsyncadd [#allocation21], 4294965232  ;;  %v2465_v0 = vld [vmem:[#allocation7] sm:$0xff]   ;;  %vm255_vm0 = vcmask 130048   ;;  %v2467_v2 = vld [vmem:[#allocation2 + $0x8] sm:$0xff]   ;;  %v2921_v17 = vmov 0   ;;  %v474_v26 = vlaneseq }
  0xea   :  { %v2466_v1 = vld [vmem:[#allocation2] sm:$0xff]   ;;  %2179 = vmatprep.subr.bf16.mxu0 %v2465_v0  ;;  %v2468_v3 = vld [vmem:[#allocation10] sm:$0xff]   ;;  %v2469_v4 = vld [vmem:[#allocation10 + $0x8] sm:$0xff]   ;;  %2464 = vset.pattern.permute.xlu1 %v2921_v17  ;;  %s2922_s12 = smov 127   ;;  %vm502_vm3 = vcmask 261120   ;;  %vm2924_vm14 = vmmov 0  }
  0xeb   :  { %2180 = vmatpush3.bf16.msra.mxu0 %v2465_v0  ;;  %2181 = vmatprep.mubr.msk.bf16.mxu0 %vm255_vm0, %v2466_v1  ;;  %v2470_v5 = vld [vmem:[#allocation10 + $0x10] sm:$0xff]   ;;  %v2471_v6 = vld [vmem:[#allocation10 + $0x18] sm:$0xff]   ;;  %v2472_v7 = vld [vmem:[#allocation10 + $0x20] sm:$0xff]   ;;  %v3182_v28 = vshrl.u32 %v474_v26, 7  ;;  %vm1741_vm15 = vcmask 1043456   ;;  %s2926_s11 = smov [#allocation23]  }
  0xec   :  { %2185 = vmatprep.subr.bf16.mxu1 %v2468_v3  ;;  %v2473_v8 = vld [vmem:[#allocation10 + $0x28] sm:$0xff]   ;;  %v2474_v9 = vld [vmem:[#allocation10 + $0x30] sm:$0xff]   ;;  %v2475_v10 = vld [vmem:[#allocation10 + $0x38] sm:$0xff]   ;;  %2463 = vset.pattern.permute.xlu0 %v2921_v17  ;;  %s1995_s6 = sshll.u32 %s2926_s11, 4  ;;  %s1996_s6 = int_to_ptr.vmem [resolvable:$true] %s1995_s6 }
  0xed   :  { %2186 = vmatpush3.bf16.msra.mxu1 %v2468_v3  ;;  %v3185_v30 = vsub.s32 0, %v3182_v28  ;;  %v2067_v34 = vld [vmem:[#allocation5] sm:$0xff]   ;;  %v2074_v45 = vld [vmem:[#allocation5 + $0x8] sm:$0xff]   ;;  %s2866_s7 = scalar_lea.vmem %s1996_s6, 32  ;;  %p2871_p7 = scmp.lt.s32.totalorder %s1996_s6, %s1996_s6 }
  0xee   :  { %2182 = vmatmul.mubr.msk.bf16.vlgmr.msra.gmra.mrb[0].mxu0 %vm255_vm0, %v2467_v2  ;;  %2187 = vmatprep.subr.bf16.mxu1 %v2469_v4  ;;  %v3188_v38 = vunpack.c.l.bf16 %v2067_v34  ;;  %v3190_v42 = vunpack.c.h.bf16 %v2067_v34  ;;  %v3195_v51 = vunpack.c.l.bf16 %v2074_v45  ;;  %v3199_v56 = vunpack.c.h.bf16 %v2074_v45  ;;  %p2867_p6 = scmp.ne.s32.totalorder %s1996_s6, %s2866_s7  ;;  %p2872_p8 = scmp.lt.s32.totalorder %s2866_s7, %s2866_s7 }
  0xef   :  { %vm1737_vm0 = vcmask 31744  }
  0xf0   :  { %p2873_p9 = por %p2872_p8, %p2871_p7 }
  0xf1   :  { %2188 = vmatpush3.bf16.msra.mxu1 %v2469_v4 }
  0xf2   :  { %2189 = vmatprep.subr.bf16.mxu1 %v2470_v5  ;;  %p2874_p10 = pnand %p2873_p9, %p2867_p6 }
  0xf5   :  { %2190 = vmatpush3.bf16.msra.mxu1 %v2470_v5 }
  0xf6   :  { %2191 = vmatprep.subr.bf16.mxu1 %v2471_v6 }
  0xf9   :  { %2192 = vmatpush3.bf16.msra.mxu1 %v2471_v6 }
  0xfa   :  { %2193 = vmatprep.subr.bf16.mxu1 %v2472_v7 }
  0xfd   :  { %2194 = vmatpush3.bf16.msra.mxu1 %v2472_v7 }
  0xfe   :  { %2195 = vmatprep.subr.bf16.mxu1 %v2473_v8 }
 0x101   :  { %2196 = vmatpush3.bf16.msra.mxu1 %v2473_v8 }
 0x102   :  { %2197 = vmatprep.subr.bf16.mxu1 %v2474_v9 }
 0x105   :  { %2198 = vmatpush3.bf16.msra.mxu1 %v2474_v9 }
 0x106   :  { %2199 = vmatprep.subr.bf16.mxu1 %v2475_v10 }
 0x109   :  { %2200 = vmatpush3.bf16.msra.mxu1 %v2475_v10 }
 0x1c1   :  { %v2183_v11 = vpop.f32.mrb[0].mxu0 }
 0x1c2   :  { %v296_v12 = vpop.f32.mrb[1].mxu0 }
 0x1c3   :  { %v2184_v13 = vpop.f32.mrb[2].mxu0 }
 0x1c4   :  { %v312_v14 = vpack.c.bf16 %v2184_v13, %v2183_v11  ;;  %v299_v15 = vpop.f32.mrb[3].mxu0 }
 0x1c5   :  { %v311_v16 = vpack.c.bf16 %v299_v15, %v296_v12 }
 0x1c7   :  { %2201 = vmatprep.mubr.bf16.mxu1 %v311_v16  ;;  %2205 = vmatprep.subr.bf16.mxu0 %v311_v16 }
 0x1c8   :  { %2202 = vmatmul.mubr.bf16.vlgmr.msra.gmra.mrb[0].mxu1 %v312_v14  ;;  %2206 = vmatpush3.bf16.msra.mxu0 %v311_v16 }
 0x1c9   :  { %2207 = vmatprep.subr.bf16.mxu0 %v312_v14 }
 0x1cc   :  { %2208 = vmatpush3.bf16.msra.mxu0 %v312_v14 }
 0x29b   :  { %v2203_v18 = vpop.f32.mrb[0].mxu1 }
 0x29c   :  { %418 = vrot.lane.b32.xlu1 %v2203_v18, %s2922_s12  ;;  %v395_v19 = vpop.f32.mrb[1].mxu1 }
 0x29d   :  { %414 = vrot.lane.b32.xlu0 %v395_v19, %s2922_s12  ;;  %v2204_v20 = vpop.f32.mrb[2].mxu1 }
 0x29e   :  { %v398_v21 = vpop.f32.mrb[3].mxu1 }
 0x2a0   :  { %420 = vrot.lane.b32.xlu1 %v2204_v20, %s2922_s12 }
 0x2a1   :  { %416 = vrot.lane.b32.xlu0 %v398_v21, %s2922_s12 }
 0x2a4   :  { %467 = vperm.xlu1 %2464, %v2203_v18  }
 0x2a5   :  { %459 = vperm.xlu0 %2463, %v395_v19  }
 0x2a8   :  { %463 = vperm.xlu1 %2464, %v398_v21  }
 0x2a9   :  { %471 = vperm.xlu0 %2463, %v2204_v20  }
 0x30e   :  { %v419_v24 = vpop.permute.xlu1 %418 }
 0x30f   :  { %v415_v22 = vpop.permute.xlu0 %414 }
 0x310   :  { %426 = vxpose.xlu1.b32.start [1/4] (short) (narrow) %v415_v22, 8  ;;  %v3210_v22 = vld [vmem:[#allocation11] sm:$0x7] }
 0x312   :  { %v421_v25 = vpop.permute.xlu1 %420 }
 0x313   :  { %v417_v23 = vpop.permute.xlu0 %416 }
 0x314   :  { %427 = vxpose.xlu1.b32.cont [2/4] (short) (narrow) %v417_v23, 8 }
 0x318   :  { %428 = vxpose.xlu1.b32.cont [3/4] (short) (narrow) %v419_v24, 8  ;;  %v607_v24 = vrot.slane %v3210_v22, %v3185_v30 }
 0x31c   :  { %429 = vxpose.xlu1.b32.end [4/4] (short) (narrow) %v421_v25, 8 }
 0x323   :  { %v468_v27 = vpop.permute.xlu1 %467 }
 0x324   :  { %v460_v31 = vpop.permute.xlu0 %459 }
 0x327   :  { %v464_v29 = vpop.permute.xlu1 %463 }
 0x328   :  { %v472_v41 = vpop.permute.xlu0 %471 }
 0x390   :  { %v442_v32 = vpop.trf.xlu1 }
 0x391   :  { %v477_v33 = vrot.slane %v442_v32, %v3185_v30 }
 0x393   :  { %v478_v35 = vadd.f32 %v477_v33, %v460_v31  ;;  %v479_v36 = vadd.f32 %v477_v33, %v464_v29  ;;  %v480_v37 = vadd.f32 %v477_v33, %v468_v27  ;;  %v481_v47 = vadd.f32 %v477_v33, %v472_v41 }
 0x395   :  { %vm482_vm1 = vcmp.gt.f32.partialorder %v478_v35, 0.0  ;;  %v486_v39 = vmul.f32 0.2, %v478_v35  ;;  %vm483_vm2 = vcmp.gt.f32.partialorder %v479_v36, 0.0  ;;  %v487_v40 = vmul.f32 0.2, %v479_v36 }
 0x396   :  { %v488_v46 = vmul.f32 0.2, %v480_v37  ;;  %vm484_vm4 = vcmp.gt.f32.partialorder %v480_v37, 0.0  ;;  %v489_v53 = vmul.f32 0.2, %v481_v47  ;;  %vm485_vm5 = vcmp.gt.f32.partialorder %v481_v47, 0.0 }
 0x397   :  { %v490_v43 = vsel %vm482_vm1, %v478_v35, %v486_v39  ;;  %v491_v44 = vsel %vm483_vm2, %v479_v36, %v487_v40  ;;  %vm1987_vm1 = vcmask 58368  }
 0x398   :  { %v498_v48 = vadd.f32 %v3188_v38, %v490_v43  ;;  %v499_v50 = vadd.f32 %v3190_v42, %v491_v44  ;;  %v492_v52 = vsel %vm484_vm4, %v480_v37, %v488_v46  ;;  %v493_v57 = vsel %vm485_vm5, %v481_v47, %v489_v53 }
 0x399   :  { %v500_v55 = vadd.f32 %v3195_v51, %v492_v52  ;;  %v501_v59 = vadd.f32 %v3199_v56, %v493_v57 }
 0x39a   :  { %v503_v49 = vsel %vm502_vm3, %v498_v48, -inf  ;;  %v506_v54 = vsel %vm502_vm3, %v499_v50, -inf }
 0x39b   :  { %504 = vmax.xlane.f32.xlu0 %v503_v49  ;;  %v509_v58 = vsel %vm502_vm3, %v500_v55, -inf  ;;  %v512_v60 = vsel %vm502_vm3, %v501_v59, -inf }
 0x39f   :  { %507 = vmax.xlane.f32.xlu0 %v506_v54 }
 0x3a3   :  { %510 = vmax.xlane.f32.xlu0 %v509_v58 }
 0x3a7   :  { %513 = vmax.xlane.f32.xlu0 %v512_v60 }
 0x428   :  { %v505_v61 = vpop.xlane.xlu0 %504 }
 0x429   :  { %v515_v62 = vsub.f32 %v498_v48, %v505_v61 }
 0x42b   :  { %v519_v63 = vmul.f32 1.442695, %v515_v62 }
 0x42c   :  { %v508_v0 = vpop.xlane.xlu0 %507 }
 0x42d   :  { %2508 = vpow2.f32 %v519_v63  ;;  %v516_v1 = vsub.f32 %v499_v50, %v508_v0  ;;  %v2476_v63 = vld [vmem:[#allocation8] sm:$0xff]   ;;  %v2477_v0 = vld [vmem:[#allocation8 + $0x8] sm:$0xff]  }
 0x42e   :  { %2213 = vmatprep.subr.bf16.mxu0 %v2476_v63 }
 0x42f   :  { %v521_v2 = vmul.f32 1.442695, %v516_v1  ;;  %v2478_v1 = vld [vmem:[#allocation8 + $0x10] sm:$0xff]  }
 0x430   :  { %v511_v3 = vpop.xlane.xlu0 %510 }
 0x431   :  { %2510 = vpow2.f32 %v521_v2  ;;  %v517_v4 = vsub.f32 %v500_v55, %v511_v3  ;;  %v2479_v2 = vld [vmem:[#allocation8 + $0x18] sm:$0xff]   ;;  %v2480_v3 = vld [vmem:[#allocation8 + $0x20] sm:$0xff]  }
 0x433   :  { %v523_v5 = vmul.f32 1.442695, %v517_v4  ;;  %v2481_v4 = vld [vmem:[#allocation8 + $0x28] sm:$0xff]  }
 0x434   :  { %v514_v6 = vpop.xlane.xlu0 %513 }
 0x435   :  { %2512 = vpow2.f32 %v523_v5  ;;  %v518_v7 = vsub.f32 %v501_v59, %v514_v6  ;;  %v2482_v5 = vld [vmem:[#allocation8 + $0x30] sm:$0xff]   ;;  %v2483_v6 = vld [vmem:[#allocation8 + $0x38] sm:$0xff]  }
 0x437   :  { %v2509_v8 = vpop.eup %2508  ;;  %v525_v9 = vmul.f32 1.442695, %v518_v7  ;;  %v2484_v7 = vld [vmem:[#allocation10 + $0x40] sm:$0xff]  }
 0x438   :  { %v527_v10 = vsel %vm502_vm3, %v2509_v8, 0.0  ;;  %2233 = vmatprep.subr.bf16.mxu1 %v2484_v7 }
 0x439   :  { %2514 = vpow2.f32 %v525_v9  ;;  %528 = vadd.xlane.f32.xlu0 %v527_v10  ;;  %2234 = vmatpush3.bf16.msra.mxu1 %v2484_v7  ;;  %v2486_v9 = vld [vmem:[#allocation10 + $0x50] sm:$0xff]   ;;  %v2487_v10 = vld [vmem:[#allocation10 + $0x58] sm:$0xff]  }
 0x43b   :  { %v2511_v11 = vpop.eup %2510 }
 0x43c   :  { %v530_v12 = vsel %vm502_vm3, %v2511_v11, 0.0  ;;  %v539_v13 = vpack.c.bf16 %v2511_v11, %v2509_v8  ;;  %v2485_v8 = vld [vmem:[#allocation10 + $0x48] sm:$0xff]   ;;  %v2488_v11 = vld [vmem:[#allocation10 + $0x60] sm:$0xff]  }
 0x43d   :  { %531 = vadd.xlane.f32.xlu0 %v530_v12  ;;  %2235 = vmatprep.subr.bf16.mxu1 %v2485_v8  ;;  %v2489_v12 = vld [vmem:[#allocation10 + $0x68] sm:$0xff]  }
 0x43e   :  { %2209 = vmatprep.mubr.msk.bf16.mxu0 %vm502_vm3, %v539_v13  ;;  %2236 = vmatpush3.bf16.msra.mxu1 %v2485_v8  ;;  %v2490_v13 = vld [vmem:[#allocation10 + $0x70] sm:$0xff]  }
 0x43f   :  { %v2513_v14 = vpop.eup %2512  ;;  %2237 = vmatprep.subr.bf16.mxu1 %v2486_v9 }
 0x440   :  { %v533_v15 = vsel %vm502_vm3, %v2513_v14, 0.0 }
 0x441   :  { %534 = vadd.xlane.f32.xlu1 %v533_v15 }
 0x442   :  { %2238 = vmatpush3.bf16.msra.mxu1 %v2486_v9 }
 0x443   :  { %v2515_v16 = vpop.eup %2514  ;;  %2239 = vmatprep.subr.bf16.mxu1 %v2487_v10 }
 0x444   :  { %v536_v17 = vsel %vm502_vm3, %v2515_v16, 0.0  ;;  %v540_v18 = vpack.c.bf16 %v2515_v16, %v2513_v14 }
 0x445   :  { %537 = vadd.xlane.f32.xlu0 %v536_v17 }
 0x446   :  { %2210 = vmatmul.mubr.msk.bf16.vlgmr.msra.gmra.mrb[4].mxu0 %vm502_vm3, %v540_v18  ;;  %2240 = vmatpush3.bf16.msra.mxu1 %v2487_v10 }
 0x447   :  { %2214 = vmatpush3.bf16.msra.mxu0 %v2476_v63  ;;  %2241 = vmatprep.subr.bf16.mxu1 %v2488_v11 }
 0x448   :  { %2215 = vmatprep.subr.bf16.mxu0 %v2477_v0 }
 0x44a   :  { %2242 = vmatpush3.bf16.msra.mxu1 %v2488_v11 }
 0x44b   :  { %2216 = vmatpush3.bf16.msra.mxu0 %v2477_v0  ;;  %2243 = vmatprep.subr.bf16.mxu1 %v2489_v12 }
 0x44c   :  { %2217 = vmatprep.subr.bf16.mxu0 %v2478_v1 }
 0x44e   :  { %2244 = vmatpush3.bf16.msra.mxu1 %v2489_v12 }
 0x44f   :  { %2218 = vmatpush3.bf16.msra.mxu0 %v2478_v1  ;;  %2245 = vmatprep.subr.bf16.mxu1 %v2490_v13 }
 0x450   :  { %2219 = vmatprep.subr.bf16.mxu0 %v2479_v2 }
 0x452   :  { %2246 = vmatpush3.bf16.msra.mxu1 %v2490_v13 }
 0x453   :  { %2220 = vmatpush3.bf16.msra.mxu0 %v2479_v2 }
 0x454   :  { %2221 = vmatprep.subr.bf16.mxu0 %v2480_v3 }
 0x457   :  { %2222 = vmatpush3.bf16.msra.mxu0 %v2480_v3 }
 0x458   :  { %2223 = vmatprep.subr.bf16.mxu0 %v2481_v4 }
 0x45b   :  { %2224 = vmatpush3.bf16.msra.mxu0 %v2481_v4 }
 0x45c   :  { %2225 = vmatprep.subr.bf16.mxu0 %v2482_v5 }
 0x45f   :  { %2226 = vmatpush3.bf16.msra.mxu0 %v2482_v5 }
 0x460   :  { %2227 = vmatprep.subr.bf16.mxu0 %v2483_v6 }
 0x463   :  { %2228 = vmatpush3.bf16.msra.mxu0 %v2483_v6 }
 0x4c6   :  { %v529_v19 = vpop.xlane.xlu0 %528 }
 0x4ca   :  { %v532_v21 = vpop.xlane.xlu0 %531 }
 0x4ce   :  { %v535_v20 = vpop.xlane.xlu1 %534 }
 0x4cf   :  { %2516 = vrcp.f32 %v535_v20 }
 0x4d0   :  { %2518 = vrcp.f32 %v529_v19 }
 0x4d1   :  { %2520 = vrcp.f32 %v532_v21 }
 0x4d2   :  { %v538_v23 = vpop.xlane.xlu0 %537 }
 0x4d3   :  { %2522 = vrcp.f32 %v538_v23 }
 0x4d9   :  { %v2517_v25 = vpop.eup %2516 }
 0x4da   :  { %v2519_v31 = vpop.eup %2518 }
 0x4db   :  { %v2521_v36 = vpop.eup %2520 }
 0x4dd   :  { %v2523_v40 = vpop.eup %2522 }
 0x519   :  { %v2211_v26 = vpop.f32.mrb[4].mxu0 }
 0x51a   :  { %v602_v27 = vmul.f32 %v2517_v25, %v2211_v26  ;;  %v581_v29 = vpop.f32.mrb[5].mxu0 }
 0x51b   :  { %v2212_v32 = vpop.f32.mrb[6].mxu0  ;;  %v600_v33 = vmul.f32 %v2519_v31, %v581_v29 }
 0x51c   :  { %v584_v34 = vpop.f32.mrb[7].mxu0  ;;  %v610_v35 = vadd.f32 %v607_v24, %v602_v27  ;;  %v603_v41 = vmul.f32 %v2523_v40, %v2212_v32  ;;  %v3231_v27 = vsub.s32 1, %v3182_v28 }
 0x51d   :  { %v601_v37 = vmul.f32 %v2521_v36, %v584_v34  ;;  %v608_v39 = vadd.f32 %v607_v24, %v600_v33  ;;  %v3236_v33 = vsub.s32 2, %v3182_v28 }
 0x51e   :  { %616 = vadd.xlane.f32.xlu0 %v610_v35  ;;  %v611_v44 = vadd.f32 %v607_v24, %v603_v41  ;;  %v660_v32 = vrot.slane %v3210_v22, %v3231_v27 }
 0x51f   :  { %v609_v43 = vadd.f32 %v607_v24, %v601_v37 }
 0x522   :  { %612 = vadd.xlane.f32.xlu0 %v608_v39 }
 0x526   :  { %614 = vadd.xlane.f32.xlu0 %v609_v43 }
 0x52a   :  { %618 = vadd.xlane.f32.xlu0 %v611_v44 }
 0x5ab   :  { %v617_v45 = vpop.xlane.xlu0 %616 }
 0x5ac   :  { %v623_v46 = vmul.f32 0.0078125, %v617_v45 }
 0x5ae   :  { %v3214_v47 = vsub.f32 %v610_v35, %v623_v46 }
 0x5af   :  { %v613_v48 = vpop.xlane.xlu0 %612 }
 0x5b0   :  { %v621_v49 = vmul.f32 0.0078125, %v613_v48  ;;  %v631_v50 = vmul.f32 %v3214_v47, %v3214_v47 }
 0x5b2   :  { %v3218_v52 = vsub.f32 %v608_v39, %v621_v49  ;;  %637 = vadd.xlane.f32.xlu0 %v631_v50  ;;  %v668_v39 = vrot.slane %v3210_v22, %v3236_v33  ;;  %v2491_v22 = vld [vmem:[#allocation10 + $0x78] sm:$0xff]  }
 0x5b3   :  { %v615_v53 = vpop.xlane.xlu0 %614  ;;  %2247 = vmatprep.subr.bf16.mxu1 %v2491_v22 }
 0x5b4   :  { %v622_v54 = vmul.f32 0.0078125, %v615_v53  ;;  %v629_v55 = vmul.f32 %v3218_v52, %v3218_v52  ;;  %2248 = vmatpush3.bf16.msra.mxu1 %v2491_v22 }
 0x5b6   :  { %v3222_v57 = vsub.f32 %v609_v43, %v622_v54  ;;  %633 = vadd.xlane.f32.xlu0 %v629_v55 }
 0x5b7   :  { %v619_v58 = vpop.xlane.xlu0 %618 }
 0x5b8   :  { %v624_v59 = vmul.f32 0.0078125, %v619_v58  ;;  %v630_v60 = vmul.f32 %v3222_v57, %v3222_v57 }
 0x5ba   :  { %v3226_v61 = vsub.f32 %v611_v44, %v624_v59  ;;  %635 = vadd.xlane.f32.xlu0 %v630_v60 }
 0x5bc   :  { %v632_v62 = vmul.f32 %v3226_v61, %v3226_v61 }
 0x5be   :  { %639 = vadd.xlane.f32.xlu0 %v632_v62 }
 0x63f   :  { %v638_v14 = vpop.xlane.xlu0 %637 }
 0x640   :  { %v643_v15 = vmul.f32 0.0078125, %v638_v14 }
 0x642   :  { %v647_v16 = vadd.f32 1e-05, %v643_v15 }
 0x643   :  { %v634_v17 = vpop.xlane.xlu0 %633 }
 0x644   :  { %v641_v18 = vmul.f32 0.0078125, %v634_v17  ;;  %2524 = vrsqrt.f32 %v647_v16 }
 0x646   :  { %v645_v19 = vadd.f32 1e-05, %v641_v18 }
 0x647   :  { %v636_v20 = vpop.xlane.xlu0 %635 }
 0x648   :  { %2526 = vrsqrt.f32 %v645_v19  ;;  %v642_v21 = vmul.f32 0.0078125, %v636_v20 }
 0x64a   :  { %v646_v23 = vadd.f32 1e-05, %v642_v21 }
 0x64b   :  { %v640_v24 = vpop.xlane.xlu0 %639 }
 0x64c   :  { %2528 = vrsqrt.f32 %v646_v23  ;;  %v644_v25 = vmul.f32 0.0078125, %v640_v24 }
 0x64e   :  { %v648_v26 = vadd.f32 1e-05, %v644_v25  ;;  %v2525_v29 = vpop.eup %2524 }
 0x64f   :  { %v655_v35 = vmul.f32 %v2525_v29, %v3214_v47 }
 0x650   :  { %2530 = vrsqrt.f32 %v648_v26 }
 0x651   :  { %v663_v44 = vmul.f32 %v660_v32, %v655_v35 }
 0x652   :  { %v2527_v31 = vpop.eup %2526 }
 0x653   :  { %v653_v34 = vmul.f32 %v2527_v31, %v3218_v52  ;;  %v671_v52 = vadd.f32 %v668_v39, %v663_v44 }
 0x655   :  { %v661_v36 = vmul.f32 %v660_v32, %v653_v34  ;;  %v675_v54 = vmax.f32 %v671_v52, 0.0 }
 0x656   :  { %v2529_v37 = vpop.eup %2528 }
 0x657   :  { %v654_v40 = vmul.f32 %v2529_v37, %v3222_v57  ;;  %v669_v43 = vadd.f32 %v668_v39, %v661_v36 }
 0x659   :  { %v662_v41 = vmul.f32 %v660_v32, %v654_v40  ;;  %v673_v28 = vmax.f32 %v669_v43, 0.0 }
 0x65a   :  { %v2531_v45 = vpop.eup %2530 }
 0x65b   :  { %v656_v46 = vmul.f32 %v2531_v45, %v3226_v61  ;;  %v670_v48 = vadd.f32 %v668_v39, %v662_v41 }
 0x65d   :  { %v674_v49 = vmax.f32 %v670_v48, 0.0  ;;  %v664_v50 = vmul.f32 %v660_v32, %v656_v46 }
 0x65f   :  { %v677_v53 = vpack.c.bf16 %v674_v49, %v673_v28  ;;  %v672_v47 = vadd.f32 %v668_v39, %v664_v50 }
 0x661   :  { %2229 = vmatprep.mubr.bf16.mxu0 %v677_v53  ;;  %v676_v55 = vmax.f32 %v672_v47, 0.0 }
 0x663   :  { %v678_v58 = vpack.c.bf16 %v676_v55, %v675_v54 }
 0x665   :  { %2230 = vmatmul.mubr.bf16.vlgmr.msra.gmra.mrb[8].mxu0 %v678_v58 }
 0x738   :  { %v2231_v57 = vpop.f32.mrb[8].mxu0 }
 0x739   :  { %v796_v59 = vpop.f32.mrb[9].mxu0 }
 0x73a   :  { %v2232_v60 = vpop.f32.mrb[10].mxu0 }
 0x73b   :  { %v812_v62 = vpack.c.bf16 %v2232_v60, %v2231_v57  ;;  %v799_v61 = vpop.f32.mrb[11].mxu0 }
 0x73c   :  { %v811_v63 = vpack.c.bf16 %v799_v61, %v796_v59 }
 0x73e   :  { %2249 = vmatprep.mubr.bf16.mxu1 %v811_v63  ;;  %2253 = vmatprep.subr.bf16.mxu0 %v811_v63 }
 0x73f   :  { %2250 = vmatmul.mubr.bf16.vlgmr.msra.gmra.mrb[4].mxu1 %v812_v62  ;;  %2254 = vmatpush3.bf16.msra.mxu0 %v811_v63 }
 0x740   :  { %2255 = vmatprep.subr.bf16.mxu0 %v812_v62 }
 0x743   :  { %2256 = vmatpush3.bf16.msra.mxu0 %v812_v62 }
 0x812   :  { %v2251_v0 = vpop.f32.mrb[4].mxu1 }
 0x813   :  { %v895_v1 = vpop.f32.mrb[5].mxu1 }
 0x814   :  { %914 = vrot.lane.b32.xlu0 %v895_v1, %s2922_s12  ;;  %v2252_v2 = vpop.f32.mrb[6].mxu1 }
 0x815   :  { %v898_v3 = vpop.f32.mrb[7].mxu1 }
 0x816   :  { %916 = vrot.lane.b32.xlu1 %v898_v3, %s2922_s12 }
 0x818   :  { %920 = vrot.lane.b32.xlu0 %v2252_v2, %s2922_s12 }
 0x81a   :  { %918 = vrot.lane.b32.xlu1 %v2251_v0, %s2922_s12 }
 0x81c   :  { %963 = vperm.xlu0 %2463, %v898_v3  }
 0x81e   :  { %959 = vperm.xlu1 %2464, %v895_v1  }
 0x820   :  { %971 = vperm.xlu0 %2463, %v2252_v2   ;;  %v3263_v2 = vld [vmem:[#allocation11 + $0x4] sm:$0x7] }
 0x822   :  { %967 = vperm.xlu1 %2464, %v2251_v0  }
 0x886   :  { %v915_v4 = vpop.permute.xlu0 %914 }
 0x887   :  { %926 = vxpose.xlu1.b32.start [1/4] (short) (narrow) %v915_v4, 8  ;;  %v1102_v4 = vrot.slane %v3263_v2, %v3185_v30 }
 0x888   :  { %v917_v5 = vpop.permute.xlu1 %916 }
 0x88a   :  { %v921_v7 = vpop.permute.xlu0 %920 }
 0x88b   :  { %927 = vxpose.xlu1.b32.cont [2/4] (short) (narrow) %v917_v5, 8 }
 0x88c   :  { %v919_v6 = vpop.permute.xlu1 %918 }
 0x88f   :  { %928 = vxpose.xlu1.b32.cont [3/4] (short) (narrow) %v919_v6, 8 }
 0x893   :  { %929 = vxpose.xlu1.b32.end [4/4] (short) (narrow) %v921_v7, 8 }
 0x89b   :  { %v964_v10 = vpop.permute.xlu0 %963 }
 0x89d   :  { %v960_v8 = vpop.permute.xlu1 %959 }
 0x89f   :  { %v972_v18 = vpop.permute.xlu0 %971 }
 0x8a1   :  { %v968_v9 = vpop.permute.xlu1 %967 }
 0x907   :  { %v942_v11 = vpop.trf.xlu1 }
 0x908   :  { %v977_v12 = vrot.slane %v942_v11, %v3185_v30 }
 0x90a   :  { %v978_v13 = vadd.f32 %v977_v12, %v960_v8  ;;  %v979_v14 = vadd.f32 %v977_v12, %v964_v10  ;;  %v980_v15 = vadd.f32 %v977_v12, %v968_v9  ;;  %v981_v23 = vadd.f32 %v977_v12, %v972_v18 }
 0x90c   :  { %vm982_vm6 = vcmp.gt.f32.partialorder %v978_v13, 0.0  ;;  %v986_v16 = vmul.f32 0.2, %v978_v13  ;;  %vm983_vm7 = vcmp.gt.f32.partialorder %v979_v14, 0.0  ;;  %v987_v17 = vmul.f32 0.2, %v979_v14 }
 0x90d   :  { %v988_v21 = vmul.f32 0.2, %v980_v15  ;;  %vm984_vm8 = vcmp.gt.f32.partialorder %v980_v15, 0.0  ;;  %v989_v31 = vmul.f32 0.2, %v981_v23  ;;  %vm985_vm9 = vcmp.gt.f32.partialorder %v981_v23, 0.0 }
 0x90e   :  { %v990_v19 = vsel %vm982_vm6, %v978_v13, %v986_v16  ;;  %v991_v20 = vsel %vm983_vm7, %v979_v14, %v987_v17 }
 0x90f   :  { %v994_v24 = vadd.f32 %v3188_v38, %v990_v19  ;;  %v995_v26 = vadd.f32 %v3190_v42, %v991_v20  ;;  %v992_v29 = vsel %vm984_vm8, %v980_v15, %v988_v21  ;;  %v993_v35 = vsel %vm985_vm9, %v981_v23, %v989_v31 }
 0x910   :  { %v996_v34 = vadd.f32 %v3195_v51, %v992_v29  ;;  %v997_v37 = vadd.f32 %v3199_v56, %v993_v35 }
 0x911   :  { %v998_v25 = vsel %vm502_vm3, %v994_v24, -inf  ;;  %v1001_v32 = vsel %vm502_vm3, %v995_v26, -inf }
 0x912   :  { %999 = vmax.xlane.f32.xlu0 %v998_v25  ;;  %v1004_v36 = vsel %vm502_vm3, %v996_v34, -inf  ;;  %v1007_v39 = vsel %vm502_vm3, %v997_v37, -inf }
 0x916   :  { %1002 = vmax.xlane.f32.xlu0 %v1001_v32 }
 0x91a   :  { %1005 = vmax.xlane.f32.xlu0 %v1004_v36 }
 0x91e   :  { %1008 = vmax.xlane.f32.xlu0 %v1007_v39 }
 0x99f   :  { %v1000_v40 = vpop.xlane.xlu0 %999 }
 0x9a0   :  { %v1010_v41 = vsub.f32 %v994_v24, %v1000_v40 }
 0x9a2   :  { %v1014_v43 = vmul.f32 1.442695, %v1010_v41 }
 0x9a3   :  { %v1003_v44 = vpop.xlane.xlu0 %1002 }
 0x9a4   :  { %2532 = vpow2.f32 %v1014_v43  ;;  %v1011_v45 = vsub.f32 %v995_v26, %v1003_v44  ;;  %v2492_v44 = vld [vmem:[#allocation8 + $0x40] sm:$0xff]  }
 0x9a5   :  { %2261 = vmatprep.subr.bf16.mxu0 %v2492_v44 }
 0x9a6   :  { %v1016_v46 = vmul.f32 1.442695, %v1011_v45  ;;  %v2493_v45 = vld [vmem:[#allocation8 + $0x48] sm:$0xff]  }
 0x9a7   :  { %v1006_v48 = vpop.xlane.xlu0 %1005 }
 0x9a8   :  { %2534 = vpow2.f32 %v1016_v46  ;;  %v1012_v28 = vsub.f32 %v996_v34, %v1006_v48  ;;  %v2494_v46 = vld [vmem:[#allocation8 + $0x50] sm:$0xff]   ;;  %v2495_v48 = vld [vmem:[#allocation8 + $0x58] sm:$0xff]  }
 0x9aa   :  { %v1018_v49 = vmul.f32 1.442695, %v1012_v28  ;;  %v2496_v28 = vld [vmem:[#allocation8 + $0x60] sm:$0xff]  }
 0x9ab   :  { %v1009_v50 = vpop.xlane.xlu0 %1008 }
 0x9ac   :  { %2536 = vpow2.f32 %v1018_v49  ;;  %v1013_v52 = vsub.f32 %v997_v37, %v1009_v50  ;;  %v2497_v49 = vld [vmem:[#allocation8 + $0x68] sm:$0xff]   ;;  %v2498_v50 = vld [vmem:[#allocation8 + $0x70] sm:$0xff]  }
 0x9ae   :  { %v2533_v53 = vpop.eup %2532  ;;  %v1020_v47 = vmul.f32 1.442695, %v1013_v52  ;;  %v2499_v52 = vld [vmem:[#allocation8 + $0x78] sm:$0xff]  }
 0x9af   :  { %v1022_v54 = vsel %vm502_vm3, %v2533_v53, 0.0 }
 0x9b0   :  { %2538 = vpow2.f32 %v1020_v47  ;;  %1023 = vadd.xlane.f32.xlu0 %v1022_v54  ;;  %v2501_v47 = vld [vmem:[#allocation10 + $0x88] sm:$0xff]   ;;  %v2502_v54 = vld [vmem:[#allocation10 + $0x90] sm:$0xff]  }
 0x9b2   :  { %v2535_v55 = vpop.eup %2534 }
 0x9b3   :  { %v1025_v58 = vsel %vm502_vm3, %v2535_v55, 0.0  ;;  %v1034_v22 = vpack.c.bf16 %v2535_v55, %v2533_v53  ;;  %v2500_v53 = vld [vmem:[#allocation10 + $0x80] sm:$0xff]   ;;  %v2503_v55 = vld [vmem:[#allocation10 + $0x98] sm:$0xff]  }
 0x9b4   :  { %1026 = vadd.xlane.f32.xlu0 %v1025_v58  ;;  %2281 = vmatprep.subr.bf16.mxu1 %v2500_v53  ;;  %v2504_v58 = vld [vmem:[#allocation10 + $0xa0] sm:$0xff]  }
 0x9b5   :  { %2257 = vmatprep.mubr.msk.bf16.mxu0 %vm502_vm3, %v1034_v22  ;;  %2282 = vmatpush3.bf16.msra.mxu1 %v2500_v53  ;;  %v2505_v22 = vld [vmem:[#allocation10 + $0xa8] sm:$0xff]  }
 0x9b6   :  { %v2537_v57 = vpop.eup %2536  ;;  %2283 = vmatprep.subr.bf16.mxu1 %v2501_v47 }
 0x9b7   :  { %v1028_v59 = vsel %vm502_vm3, %v2537_v57, 0.0 }
 0x9b8   :  { %1029 = vadd.xlane.f32.xlu1 %v1028_v59 }
 0x9b9   :  { %2284 = vmatpush3.bf16.msra.mxu1 %v2501_v47 }
 0x9ba   :  { %v2539_v60 = vpop.eup %2538  ;;  %2285 = vmatprep.subr.bf16.mxu1 %v2502_v54 }
 0x9bb   :  { %v1031_v62 = vsel %vm502_vm3, %v2539_v60, 0.0  ;;  %v1035_v61 = vpack.c.bf16 %v2539_v60, %v2537_v57  ;;  %v2506_v57 = vld [vmem:[#allocation10 + $0xb0] sm:$0xff]  }
 0x9bc   :  { %1032 = vadd.xlane.f32.xlu0 %v1031_v62 }
 0x9bd   :  { %2258 = vmatmul.mubr.msk.bf16.vlgmr.msra.gmra.mrb[12].mxu0 %vm502_vm3, %v1035_v61  ;;  %2286 = vmatpush3.bf16.msra.mxu1 %v2502_v54 }
 0x9be   :  { %2262 = vmatpush3.bf16.msra.mxu0 %v2492_v44  ;;  %2287 = vmatprep.subr.bf16.mxu1 %v2503_v55 }
 0x9bf   :  { %2263 = vmatprep.subr.bf16.mxu0 %v2493_v45 }
 0x9c1   :  { %2288 = vmatpush3.bf16.msra.mxu1 %v2503_v55 }
 0x9c2   :  { %2264 = vmatpush3.bf16.msra.mxu0 %v2493_v45  ;;  %2289 = vmatprep.subr.bf16.mxu1 %v2504_v58 }
 0x9c3   :  { %2265 = vmatprep.subr.bf16.mxu0 %v2494_v46 }
 0x9c5   :  { %2290 = vmatpush3.bf16.msra.mxu1 %v2504_v58 }
 0x9c6   :  { %2266 = vmatpush3.bf16.msra.mxu0 %v2494_v46  ;;  %2291 = vmatprep.subr.bf16.mxu1 %v2505_v22 }
 0x9c7   :  { %2267 = vmatprep.subr.bf16.mxu0 %v2495_v48 }
 0x9c9   :  { %2292 = vmatpush3.bf16.msra.mxu1 %v2505_v22 }
 0x9ca   :  { %2268 = vmatpush3.bf16.msra.mxu0 %v2495_v48  ;;  %2293 = vmatprep.subr.bf16.mxu1 %v2506_v57 }
 0x9cb   :  { %2269 = vmatprep.subr.bf16.mxu0 %v2496_v28 }
 0x9cd   :  { %2294 = vmatpush3.bf16.msra.mxu1 %v2506_v57 }
 0x9ce   :  { %2270 = vmatpush3.bf16.msra.mxu0 %v2496_v28 }
 0x9cf   :  { %2271 = vmatprep.subr.bf16.mxu0 %v2497_v49 }
 0x9d2   :  { %2272 = vmatpush3.bf16.msra.mxu0 %v2497_v49 }
 0x9d3   :  { %2273 = vmatprep.subr.bf16.mxu0 %v2498_v50 }
 0x9d6   :  { %2274 = vmatpush3.bf16.msra.mxu0 %v2498_v50 }
 0x9d7   :  { %2275 = vmatprep.subr.bf16.mxu0 %v2499_v52 }
 0x9da   :  { %2276 = vmatpush3.bf16.msra.mxu0 %v2499_v52 }
 0xa3d   :  { %v1024_v63 = vpop.xlane.xlu0 %1023 }
 0xa41   :  { %v1027_v1 = vpop.xlane.xlu0 %1026 }
 0xa45   :  { %v1030_v0 = vpop.xlane.xlu1 %1029 }
 0xa46   :  { %2540 = vrcp.f32 %v1030_v0 }
 0xa47   :  { %2542 = vrcp.f32 %v1024_v63 }
 0xa48   :  { %2544 = vrcp.f32 %v1027_v1 }
 0xa49   :  { %v1033_v3 = vpop.xlane.xlu0 %1032 }
 0xa4a   :  { %2546 = vrcp.f32 %v1033_v3 }
 0xa50   :  { %v2541_v5 = vpop.eup %2540 }
 0xa51   :  { %v2543_v9 = vpop.eup %2542 }
 0xa52   :  { %v2545_v14 = vpop.eup %2544 }
 0xa54   :  { %v2547_v17 = vpop.eup %2546 }
 0xa90   :  { %v2259_v6 = vpop.f32.mrb[12].mxu0 }
 0xa91   :  { %v1097_v7 = vmul.f32 %v2541_v5, %v2259_v6  ;;  %v1076_v8 = vpop.f32.mrb[13].mxu0 }
 0xa92   :  { %v2260_v10 = vpop.f32.mrb[14].mxu0  ;;  %v1095_v11 = vmul.f32 %v2543_v9, %v1076_v8 }
 0xa93   :  { %v1079_v12 = vpop.f32.mrb[15].mxu0  ;;  %v1105_v13 = vadd.f32 %v1102_v4, %v1097_v7  ;;  %v1098_v18 = vmul.f32 %v2547_v17, %v2260_v10  ;;  %v1154_v10 = vrot.slane %v3263_v2, %v3231_v27 }
 0xa94   :  { %v1096_v15 = vmul.f32 %v2545_v14, %v1079_v12  ;;  %v1103_v16 = vadd.f32 %v1102_v4, %v1095_v11 }
 0xa95   :  { %1111 = vadd.xlane.f32.xlu0 %v1105_v13  ;;  %v1106_v20 = vadd.f32 %v1102_v4, %v1098_v18 }
 0xa96   :  { %v1104_v19 = vadd.f32 %v1102_v4, %v1096_v15  ;;  %v1162_v15 = vrot.slane %v3263_v2, %v3236_v33  ;;  %v2507_v2 = vld [vmem:[#allocation10 + $0xb8] sm:$0xff]  }
 0xa97   :  { %2295 = vmatprep.subr.bf16.mxu1 %v2507_v2 }
 0xa98   :  { %2296 = vmatpush3.bf16.msra.mxu1 %v2507_v2 }
 0xa99   :  { %1107 = vadd.xlane.f32.xlu0 %v1103_v16 }
 0xa9d   :  { %1109 = vadd.xlane.f32.xlu0 %v1104_v19 }
 0xaa1   :  { %1113 = vadd.xlane.f32.xlu0 %v1106_v20 }
 0xb22   :  { %v1112_v21 = vpop.xlane.xlu0 %1111 }
 0xb23   :  { %v1117_v23 = vmul.f32 0.0078125, %v1112_v21 }
 0xb25   :  { %v3267_v24 = vsub.f32 %v1105_v13, %v1117_v23 }
 0xb26   :  { %v1108_v25 = vpop.xlane.xlu0 %1107 }
 0xb27   :  { %v1115_v26 = vmul.f32 0.0078125, %v1108_v25  ;;  %v1125_v29 = vmul.f32 %v3267_v24, %v3267_v24 }
 0xb29   :  { %v3271_v31 = vsub.f32 %v1103_v16, %v1115_v26  ;;  %1131 = vadd.xlane.f32.xlu0 %v1125_v29 }
 0xb2a   :  { %v1110_v32 = vpop.xlane.xlu0 %1109 }
 0xb2b   :  { %v1116_v34 = vmul.f32 0.0078125, %v1110_v32  ;;  %v1123_v35 = vmul.f32 %v3271_v31, %v3271_v31 }
 0xb2d   :  { %v3275_v36 = vsub.f32 %v1104_v19, %v1116_v34  ;;  %1127 = vadd.xlane.f32.xlu0 %v1123_v35 }
 0xb2e   :  { %v1114_v37 = vpop.xlane.xlu0 %1113 }
 0xb2f   :  { %v1118_v39 = vmul.f32 0.0078125, %v1114_v37  ;;  %v1124_v40 = vmul.f32 %v3275_v36, %v3275_v36 }
 0xb31   :  { %v3279_v41 = vsub.f32 %v1106_v20, %v1118_v39  ;;  %1129 = vadd.xlane.f32.xlu0 %v1124_v40 }
 0xb33   :  { %v1126_v43 = vmul.f32 %v3279_v41, %v3279_v41 }
 0xb35   :  { %1133 = vadd.xlane.f32.xlu0 %v1126_v43 }
 0xbb6   :  { %v1132_v59 = vpop.xlane.xlu0 %1131 }
 0xbb7   :  { %v1137_v60 = vmul.f32 0.0078125, %v1132_v59 }
 0xbb9   :  { %v1141_v62 = vadd.f32 1e-05, %v1137_v60 }
 0xbba   :  { %v1128_v61 = vpop.xlane.xlu0 %1127 }
 0xbbb   :  { %v1135_v63 = vmul.f32 0.0078125, %v1128_v61  ;;  %2548 = vrsqrt.f32 %v1141_v62 }
 0xbbd   :  { %v1139_v0 = vadd.f32 1e-05, %v1135_v63 }
 0xbbe   :  { %v1130_v1 = vpop.xlane.xlu0 %1129 }
 0xbbf   :  { %2550 = vrsqrt.f32 %v1139_v0  ;;  %v1136_v3 = vmul.f32 0.0078125, %v1130_v1 }
 0xbc1   :  { %v1140_v4 = vadd.f32 1e-05, %v1136_v3 }
 0xbc2   :  { %v1134_v5 = vpop.xlane.xlu0 %1133 }
 0xbc3   :  { %2552 = vrsqrt.f32 %v1140_v4  ;;  %v1138_v6 = vmul.f32 0.0078125, %v1134_v5 }
 0xbc5   :  { %v1142_v7 = vadd.f32 1e-05, %v1138_v6  ;;  %v2549_v8 = vpop.eup %2548 }
 0xbc6   :  { %v1149_v12 = vmul.f32 %v2549_v8, %v3267_v24 }
 0xbc7   :  { %2554 = vrsqrt.f32 %v1142_v7 }
 0xbc8   :  { %v1157_v19 = vmul.f32 %v1154_v10, %v1149_v12 }
 0xbc9   :  { %v2551_v9 = vpop.eup %2550 }
 0xbca   :  { %v1147_v11 = vmul.f32 %v2551_v9, %v3271_v31  ;;  %v1165_v31 = vadd.f32 %v1162_v15, %v1157_v19 }
 0xbcc   :  { %v1155_v13 = vmul.f32 %v1154_v10, %v1147_v11  ;;  %v1169_v34 = vmax.f32 %v1165_v31, 0.0 }
 0xbcd   :  { %v2553_v14 = vpop.eup %2552 }
 0xbce   :  { %v1148_v16 = vmul.f32 %v2553_v14, %v3275_v36  ;;  %v1163_v18 = vadd.f32 %v1162_v15, %v1155_v13 }
 0xbd0   :  { %v1156_v17 = vmul.f32 %v1154_v10, %v1148_v16  ;;  %v1167_v25 = vmax.f32 %v1163_v18, 0.0 }
 0xbd1   :  { %v2555_v20 = vpop.eup %2554 }
 0xbd2   :  { %v1150_v21 = vmul.f32 %v2555_v20, %v3279_v41  ;;  %v1164_v23 = vadd.f32 %v1162_v15, %v1156_v17 }
 0xbd4   :  { %v1168_v26 = vmax.f32 %v1164_v23, 0.0  ;;  %v1158_v29 = vmul.f32 %v1154_v10, %v1150_v21 }
 0xbd6   :  { %v1171_v32 = vpack.c.bf16 %v1168_v26, %v1167_v25  ;;  %v1166_v24 = vadd.f32 %v1162_v15, %v1158_v29 }
 0xbd8   :  { %2277 = vmatprep.mubr.bf16.mxu0 %v1171_v32  ;;  %v1170_v35 = vmax.f32 %v1166_v24, 0.0 }
 0xbda   :  { %v1172_v37 = vpack.c.bf16 %v1170_v35, %v1169_v34 }
 0xbdc   :  { %2278 = vmatmul.mubr.bf16.vlgmr.msra.gmra.mrb[16].mxu0 %v1172_v37 }
 0xcaf   :  { %v2279_v36 = vpop.f32.mrb[16].mxu0 }
 0xcb0   :  { %v1291_v39 = vpop.f32.mrb[17].mxu0 }
 0xcb1   :  { %v2280_v40 = vpop.f32.mrb[18].mxu0 }
 0xcb2   :  { %v1307_v43 = vpack.c.bf16 %v2280_v40, %v2279_v36  ;;  %v1294_v41 = vpop.f32.mrb[19].mxu0 }
 0xcb3   :  { %v1306_v44 = vpack.c.bf16 %v1294_v41, %v1291_v39  ;;  %v3310_v41 = vld [vmem:[#allocation11 + $0x8] sm:$0x7] }
 0xcb5   :  { %2297 = vmatprep.mubr.bf16.mxu1 %v1306_v44  ;;  %2301 = vmatprep.subr.bf16.mxu0 %v1306_v44 }
 0xcb6   :  { %2298 = vmatmul.mubr.bf16.vlgmr.msra.gmra.mrb[8].mxu1 %v1307_v43  ;;  %2302 = vmatpush3.bf16.msra.mxu0 %v1306_v44 }
 0xcb7   :  { %2303 = vmatprep.subr.bf16.mxu0 %v1307_v43 }
 0xcba   :  { %2304 = vmatpush3.bf16.msra.mxu0 %v1307_v43 }
 0xd89   :  { %v2299_v45 = vpop.f32.mrb[8].mxu1 }
 0xd8a   :  { %v1390_v46 = vpop.f32.mrb[9].mxu1 }
 0xd8b   :  { %1409 = vrot.lane.b32.xlu0 %v1390_v46, %s2922_s12  ;;  %v2300_v48 = vpop.f32.mrb[10].mxu1 }
 0xd8c   :  { %v1393_v28 = vpop.f32.mrb[11].mxu1 }
 0xd8d   :  { %1411 = vrot.lane.b32.xlu1 %v1393_v28, %s2922_s12 }
 0xd8f   :  { %1415 = vrot.lane.b32.xlu0 %v2300_v48, %s2922_s12 }
 0xd91   :  { %1413 = vrot.lane.b32.xlu1 %v2299_v45, %s2922_s12 }
 0xd93   :  { %1458 = vperm.xlu0 %2463, %v1393_v28  }
 0xd95   :  { %1454 = vperm.xlu1 %2464, %v1390_v46  }
 0xd97   :  { %1466 = vperm.xlu0 %2463, %v2300_v48  }
 0xd99   :  { %1462 = vperm.xlu1 %2464, %v2299_v45   ;;  %v1597_v45 = vrot.slane %v3310_v41, %v3185_v30 }
 0xdfd   :  { %v1410_v49 = vpop.permute.xlu0 %1409 }
 0xdfe   :  { %1421 = vxpose.xlu1.b32.start [1/4] (short) (narrow) %v1410_v49, 8 }
 0xdff   :  { %v1412_v50 = vpop.permute.xlu1 %1411 }
 0xe01   :  { %v1416_v53 = vpop.permute.xlu0 %1415 }
 0xe02   :  { %1422 = vxpose.xlu1.b32.cont [2/4] (short) (narrow) %v1412_v50, 8 }
 0xe03   :  { %v1414_v52 = vpop.permute.xlu1 %1413 }
 0xe06   :  { %1423 = vxpose.xlu1.b32.cont [3/4] (short) (narrow) %v1414_v52, 8 }
 0xe0a   :  { %1424 = vxpose.xlu1.b32.end [4/4] (short) (narrow) %v1416_v53, 8 }
 0xe12   :  { %v1459_v55 = vpop.permute.xlu0 %1458 }
 0xe14   :  { %v1455_v47 = vpop.permute.xlu1 %1454 }
 0xe16   :  { %v1467_v63 = vpop.permute.xlu0 %1466 }
 0xe18   :  { %v1463_v54 = vpop.permute.xlu1 %1462 }
 0xe7e   :  { %v1437_v58 = vpop.trf.xlu1 }
 0xe7f   :  { %v1472_v22 = vrot.slane %v1437_v58, %v3185_v30 }
 0xe81   :  { %v1473_v57 = vadd.f32 %v1472_v22, %v1455_v47  ;;  %v1474_v59 = vadd.f32 %v1472_v22, %v1459_v55  ;;  %v1475_v60 = vadd.f32 %v1472_v22, %v1463_v54  ;;  %v1476_v4 = vadd.f32 %v1472_v22, %v1467_v63 }
 0xe83   :  { %vm1477_vm10 = vcmp.gt.f32.partialorder %v1473_v57, 0.0  ;;  %v1481_v62 = vmul.f32 0.2, %v1473_v57  ;;  %vm1478_vm11 = vcmp.gt.f32.partialorder %v1474_v59, 0.0  ;;  %v1482_v61 = vmul.f32 0.2, %v1474_v59 }
 0xe84   :  { %v1483_v3 = vmul.f32 0.2, %v1475_v60  ;;  %vm1479_vm12 = vcmp.gt.f32.partialorder %v1475_v60, 0.0  ;;  %v1484_v9 = vmul.f32 0.2, %v1476_v4  ;;  %vm1480_vm13 = vcmp.gt.f32.partialorder %v1476_v4, 0.0 }
 0xe85   :  { %v1485_v0 = vsel %vm1477_vm10, %v1473_v57, %v1481_v62  ;;  %v1486_v1 = vsel %vm1478_vm11, %v1474_v59, %v1482_v61 }
 0xe86   :  { %v1489_v5 = vadd.f32 %v3188_v38, %v1485_v0  ;;  %v1490_v7 = vadd.f32 %v3190_v42, %v1486_v1  ;;  %v1487_v8 = vsel %vm1479_vm12, %v1475_v60, %v1483_v3  ;;  %v1488_v12 = vsel %vm1480_vm13, %v1476_v4, %v1484_v9 }
 0xe87   :  { %v1491_v11 = vadd.f32 %v3195_v51, %v1487_v8  ;;  %v1492_v14 = vadd.f32 %v3199_v56, %v1488_v12 }
 0xe88   :  { %v1493_v6 = vsel %vm502_vm3, %v1489_v5, -inf  ;;  %v1496_v10 = vsel %vm502_vm3, %v1490_v7, -inf }
 0xe89   :  { %1494 = vmax.xlane.f32.xlu0 %v1493_v6  ;;  %v1499_v13 = vsel %vm502_vm3, %v1491_v11, -inf  ;;  %v1502_v38 = vsel %vm502_vm3, %v1492_v14, -inf }
 0xe8d   :  { %1497 = vmax.xlane.f32.xlu0 %v1496_v10 }
 0xe91   :  { %1500 = vmax.xlane.f32.xlu0 %v1499_v13 }
 0xe95   :  { %1503 = vmax.xlane.f32.xlu0 %v1502_v38  ;;  %v2923_v38 = vmov 0.0  }
 0xe96   :  { %2309 = vmatprep.subr.bf16.mxu0 %v2923_v38  ;;  %2317 = vmatprep.subr.mxu1 %v2923_v38 }
 0xe97   :  { %2319 = vmatprep.mubr.msk.f32.mxu1 %vm2924_vm14, %v2923_v38 }
 0xf16   :  { %v1495_v15 = vpop.xlane.xlu0 %1494 }
 0xf17   :  { %v1505_v42 = vsub.f32 %v1489_v5, %v1495_v15  ;;  %v1736_v15 = vld [vmem:[#allocation17 + $0x80] sm:$0xf] }
 0xf18   :  { %2318 = vmatpush3.msk.msra.mxu1 %vm1741_vm15, %v1736_v15  ;;  %v1735_v15 = vld [vmem:[#allocation16] sm:$0x3] }
 0xf19   :  { %v1509_v16 = vmul.f32 1.442695, %v1505_v42  ;;  %v2925_v42 = vmov 0.0|0.0   ;;  %2320 = vmatmul.mubr.msk.f32.vlgmr.msra.gmra.mrb[12].mxu1 %vm1737_vm0, %v1735_v15 }
 0xf1a   :  { %v1498_v17 = vpop.xlane.xlu0 %1497  ;;  %2416 = vmatprep.subr.bf16.mxu1 %v2925_v42  ;;  %2389 = vmatprep.mubr.msk.f32.mxu1 %vm2924_vm14, %v2923_v38 }
 0xf1b   :  { %2556 = vpow2.f32 %v1509_v16  ;;  %v1506_v18 = vsub.f32 %v1490_v7, %v1498_v17 }
 0xf1d   :  { %v1511_v19 = vmul.f32 1.442695, %v1506_v18 }
 0xf1e   :  { %v1501_v20 = vpop.xlane.xlu0 %1500 }
 0xf1f   :  { %2558 = vpow2.f32 %v1511_v19  ;;  %v1507_v51 = vsub.f32 %v1491_v11, %v1501_v20 }
 0xf21   :  { %v1513_v21 = vmul.f32 1.442695, %v1507_v51 }
 0xf22   :  { %v1504_v23 = vpop.xlane.xlu0 %1503 }
 0xf23   :  { %2560 = vpow2.f32 %v1513_v21  ;;  %v1508_v25 = vsub.f32 %v1492_v14, %v1504_v23  ;;  %v1712_v14 = vld [vmem:[#allocation14] sm:$0x3] }
 0xf25   :  { %v2557_v26 = vpop.eup %2556  ;;  %v1515_v56 = vmul.f32 1.442695, %v1508_v25 }
 0xf26   :  { %v1517_v29 = vsel %vm502_vm3, %v2557_v26, 0.0 }
 0xf27   :  { %2562 = vpow2.f32 %v1515_v56  ;;  %1518 = vadd.xlane.f32.xlu0 %v1517_v29 }
 0xf29   :  { %v2559_v31 = vpop.eup %2558 }
 0xf2a   :  { %v1520_v32 = vsel %vm502_vm3, %v2559_v31, 0.0  ;;  %v1529_v24 = vpack.c.bf16 %v2559_v31, %v2557_v26 }
 0xf2b   :  { %1521 = vadd.xlane.f32.xlu0 %v1520_v32 }
 0xf2c   :  { %2305 = vmatprep.mubr.msk.bf16.mxu0 %vm502_vm3, %v1529_v24  ;;  %v1649_v24 = vrot.slane %v3310_v41, %v3231_v27 }
 0xf2d   :  { %v2561_v34 = vpop.eup %2560 }
 0xf2e   :  { %v1523_v35 = vsel %vm502_vm3, %v2561_v34, 0.0 }
 0xf2f   :  { %1524 = vadd.xlane.f32.xlu1 %v1523_v35 }
 0xf31   :  { %v2563_v37 = vpop.eup %2562 }
 0xf32   :  { %v1526_v2 = vsel %vm502_vm3, %v2563_v37, 0.0  ;;  %v1530_v36 = vpack.c.bf16 %v2563_v37, %v2561_v34 }
 0xf33   :  { %1527 = vadd.xlane.f32.xlu0 %v1526_v2 }
 0xf34   :  { %2306 = vmatmul.mubr.msk.bf16.vlgmr.msra.gmra.mrb[20].mxu0 %vm502_vm3, %v1530_v36  ;;  %v1657_v36 = vrot.slane %v3310_v41, %v3236_v33  ;;  %v1720_v33 = vld [vmem:[#allocation17 + $0x8] sm:$0xff] }
 0xf35   :  { %2313 = vmatprep.mubr.msk.bf16.mxu0 %vm2924_vm14, %v2923_v38 }
 0xfb4   :  { %v1519_v39 = vpop.xlane.xlu0 %1518 }
 0xfb8   :  { %v1522_v43 = vpop.xlane.xlu0 %1521 }
 0xfbc   :  { %v1525_v40 = vpop.xlane.xlu1 %1524 }
 0xfbd   :  { %2564 = vrcp.f32 %v1525_v40 }
 0xfbe   :  { %2566 = vrcp.f32 %v1519_v39 }
 0xfbf   :  { %2568 = vrcp.f32 %v1522_v43 }
 0xfc0   :  { %v1528_v44 = vpop.xlane.xlu0 %1527 }
 0xfc1   :  { %2570 = vrcp.f32 %v1528_v44 }
 0xfc7   :  { %v2565_v46 = vpop.eup %2564 }
 0xfc8   :  { %v2567_v50 = vpop.eup %2566 }
 0xfc9   :  { %v2569_v55 = vpop.eup %2568 }
 0xfcb   :  { %v2571_v57 = vpop.eup %2570 }
0x1007   :  { %v2307_v48 = vpop.f32.mrb[20].mxu0 }
0x1008   :  { %v1592_v28 = vmul.f32 %v2565_v46, %v2307_v48  ;;  %v1571_v49 = vpop.f32.mrb[21].mxu0 }
0x1009   :  { %v2308_v52 = vpop.f32.mrb[22].mxu0  ;;  %v1590_v47 = vmul.f32 %v2567_v50, %v1571_v49 }
0x100a   :  { %v1600_v53 = vadd.f32 %v1597_v45, %v1592_v28  ;;  %v1574_v54 = vpop.f32.mrb[23].mxu0  ;;  %v1593_v59 = vmul.f32 %v2571_v57, %v2308_v52  ;;  %v1721_v57 = vld [vmem:[#allocation17 + $0x10] sm:$0xff] }
0x100b   :  { %v1598_v58 = vadd.f32 %v1597_v45, %v1590_v47  ;;  %v1591_v22 = vmul.f32 %v2569_v55, %v1574_v54  ;;  %v1719_v55 = vld [vmem:[#allocation17] sm:$0xff] }
0x100c   :  { %1606 = vadd.xlane.f32.xlu0 %v1600_v53  ;;  %v1601_v30 = vadd.f32 %v1597_v45, %v1593_v59  ;;  %v1722_v59 = vld [vmem:[#allocation17 + $0x18] sm:$0xff] }
0x100d   :  { %v1599_v60 = vadd.f32 %v1597_v45, %v1591_v22  ;;  %v2393_v22 = vpack.c.bf16 %v1720_v33, %v1719_v55 }
0x1010   :  { %1602 = vadd.xlane.f32.xlu0 %v1598_v58 }
0x1014   :  { %1604 = vadd.xlane.f32.xlu0 %v1599_v60 }
0x1018   :  { %1608 = vadd.xlane.f32.xlu0 %v1601_v30 }
0x1099   :  { %v1607_v62 = vpop.xlane.xlu0 %1606 }
0x109a   :  { %v1612_v61 = vmul.f32 0.0078125, %v1607_v62  ;;  %v1724_v62 = vld [vmem:[#allocation17 + $0x28] sm:$0xff] }
0x109c   :  { %v1616_v63 = vsub.f32 %v1600_v53, %v1612_v61 }
0x109d   :  { %v1603_v0 = vpop.xlane.xlu0 %1602 }
0x109e   :  { %v1610_v1 = vmul.f32 0.0078125, %v1603_v0  ;;  %v1620_v3 = vmul.f32 %v1616_v63, %v1616_v63  ;;  %v1726_v0 = vld [vmem:[#allocation17 + $0x38] sm:$0xff] }
0x10a0   :  { %v1614_v4 = vsub.f32 %v1598_v58, %v1610_v1  ;;  %1626 = vadd.xlane.f32.xlu0 %v1620_v3  ;;  %v1666_v58 = vld [vmem:[#allocation13] sm:$0x1]  ;;  %v1727_v3 = vld [vmem:[#allocation17 + $0x40] sm:$0xff] }
0x10a1   :  { %v1605_v5 = vpop.xlane.xlu0 %1604 }
0x10a2   :  { %v1611_v6 = vmul.f32 0.0078125, %v1605_v5  ;;  %v1618_v7 = vmul.f32 %v1614_v4, %v1614_v4 }
0x10a4   :  { %v1615_v8 = vsub.f32 %v1599_v60, %v1611_v6  ;;  %1622 = vadd.xlane.f32.xlu0 %v1618_v7  ;;  %v2396_v60 = vpack.c.bf16 %v1722_v59, %v1721_v57  ;;  %v1729_v6 = vld [vmem:[#allocation17 + $0x50] sm:$0xff]  ;;  %v1730_v7 = vld [vmem:[#allocation17 + $0x58] sm:$0xff] }
0x10a5   :  { %v1609_v9 = vpop.xlane.xlu0 %1608 }
0x10a6   :  { %v1613_v10 = vmul.f32 0.0078125, %v1609_v9  ;;  %v1619_v11 = vmul.f32 %v1615_v8, %v1615_v8  ;;  %v1731_v9 = vld [vmem:[#allocation17 + $0x60] sm:$0xff] }
0x10a8   :  { %v1617_v12 = vsub.f32 %v1601_v30, %v1613_v10  ;;  %1624 = vadd.xlane.f32.xlu0 %v1619_v11  ;;  %v1723_v30 = vld [vmem:[#allocation17 + $0x20] sm:$0xff]  ;;  %v1732_v10 = vld [vmem:[#allocation17 + $0x68] sm:$0xff] }
0x10a9   :  { %v2399_v61 = vpack.c.bf16 %v1724_v62, %v1723_v30  ;;  %v2411_v11 = vpack.c.bf16 %v1732_v10, %v1731_v9 }
0x10aa   :  { %v1621_v13 = vmul.f32 %v1617_v12, %v1617_v12 }
0x10ac   :  { %1628 = vadd.xlane.f32.xlu0 %v1621_v13  ;;  %v1734_v13 = vld [vmem:[#allocation17 + $0x78] sm:$0xff] }
0x10c2   :  { %1715 = vperm.xlu0 %2463, %v1712_v14  }
0x112d   :  { %v1627_v16 = vpop.xlane.xlu0 %1626 }
0x112e   :  { %v1632_v17 = vmul.f32 0.0078125, %v1627_v16  ;;  %v1894_v16 = vld [vmem:[#allocation20] sm:$0xff] }
0x1130   :  { %v1636_v18 = vadd.f32 1e-05, %v1632_v17  ;;  %v1895_v17 = vld [vmem:[#allocation20 + $0x8] sm:$0xff] }
0x1131   :  { %v1623_v19 = vpop.xlane.xlu0 %1622 }
0x1132   :  { %v1630_v20 = vmul.f32 0.0078125, %v1623_v19  ;;  %2572 = vrsqrt.f32 %v1636_v18  ;;  %v1896_v18 = vld [vmem:[#allocation20 + $0x10] sm:$0xff]  ;;  %v2417_v19 = vpack.c.bf16 %v1895_v17, %v1894_v16 }
0x1134   :  { %v1634_v51 = vadd.f32 1e-05, %v1630_v20  ;;  %v1897_v20 = vld [vmem:[#allocation20 + $0x18] sm:$0xff]  ;;  %2418 = vmatpush3.bf16.msra.mxu1 %v2417_v19 }
0x1135   :  { %v1625_v21 = vpop.xlane.xlu0 %1624  ;;  %2419 = vmatprep.subr.bf16.mxu1 %v2925_v42 }
0x1136   :  { %2574 = vrsqrt.f32 %v1634_v51  ;;  %v1631_v23 = vmul.f32 0.0078125, %v1625_v21  ;;  %v2420_v51 = vpack.c.bf16 %v1897_v20, %v1896_v18  ;;  %v1898_v21 = vld [vmem:[#allocation20 + $0x20] sm:$0xff] }
0x1138   :  { %v1635_v25 = vadd.f32 1e-05, %v1631_v23  ;;  %v1899_v23 = vld [vmem:[#allocation20 + $0x28] sm:$0xff]  ;;  %2421 = vmatpush3.bf16.msra.mxu1 %v2420_v51 }
0x1139   :  { %v1629_v26 = vpop.xlane.xlu0 %1628  ;;  %2422 = vmatprep.subr.bf16.mxu1 %v2925_v42 }
0x113a   :  { %2576 = vrsqrt.f32 %v1635_v25  ;;  %v1633_v56 = vmul.f32 0.0078125, %v1629_v26  ;;  %v2423_v25 = vpack.c.bf16 %v1899_v23, %v1898_v21  ;;  %v1900_v26 = vld [vmem:[#allocation20 + $0x30] sm:$0xff] }
0x113c   :  { %v1637_v29 = vadd.f32 1e-05, %v1633_v56  ;;  %v2573_v31 = vpop.eup %2572  ;;  %v1901_v56 = vld [vmem:[#allocation20 + $0x38] sm:$0xff]  ;;  %2424 = vmatpush3.bf16.msra.mxu1 %v2423_v25 }
0x113d   :  { %v1644_v35 = vmul.f32 %v2573_v31, %v1616_v63  ;;  %v1725_v63 = vld [vmem:[#allocation17 + $0x30] sm:$0xff]  ;;  %2425 = vmatprep.subr.bf16.mxu1 %v2925_v42 }
0x113e   :  { %2578 = vrsqrt.f32 %v1637_v29  ;;  %v2402_v1 = vpack.c.bf16 %v1726_v0, %v1725_v63  ;;  %v2426_v29 = vpack.c.bf16 %v1901_v56, %v1900_v26  ;;  %v1902_v31 = vld [vmem:[#allocation20 + $0x40] sm:$0xff] }
0x113f   :  { %v1652_v44 = vmul.f32 %v1649_v24, %v1644_v35 }
0x1140   :  { %v2575_v32 = vpop.eup %2574  ;;  %2427 = vmatpush3.bf16.msra.mxu1 %v2426_v29 }
0x1141   :  { %v1642_v34 = vmul.f32 %v2575_v32, %v1614_v4  ;;  %v1660_v52 = vadd.f32 %v1657_v36, %v1652_v44  ;;  %v1728_v4 = vld [vmem:[#allocation17 + $0x48] sm:$0xff]  ;;  %v1903_v32 = vld [vmem:[#allocation20 + $0x48] sm:$0xff]  ;;  %2428 = vmatprep.subr.bf16.mxu1 %v2925_v42 }
0x1142   :  { %v2405_v5 = vpack.c.bf16 %v1728_v4, %v1727_v3  ;;  %v1906_v44 = vld [vmem:[#allocation20 + $0x60] sm:$0xff] }
0x1143   :  { %v1650_v37 = vmul.f32 %v1649_v24, %v1642_v34  ;;  %v1664_v47 = vmax.f32 %v1660_v52, 0.0  ;;  %v1905_v34 = vld [vmem:[#allocation20 + $0x58] sm:$0xff] }
0x1144   :  { %v2577_v2 = vpop.eup %2576 }
0x1145   :  { %v1643_v39 = vmul.f32 %v2577_v2, %v1615_v8  ;;  %v1658_v43 = vadd.f32 %v1657_v36, %v1650_v37  ;;  %v2408_v8 = vpack.c.bf16 %v1730_v7, %v1729_v6  ;;  %v1716_v37 = vpop.permute.xlu0 %1715 }
0x1147   :  { %v1651_v40 = vmul.f32 %v1649_v24, %v1643_v39  ;;  %v1662_v28 = vmax.f32 %v1658_v43, 0.0 }
0x1148   :  { %v2579_v45 = vpop.eup %2578 }
0x1149   :  { %v1645_v46 = vmul.f32 %v2579_v45, %v1617_v12  ;;  %v1659_v48 = vadd.f32 %v1657_v36, %v1651_v40  ;;  %v1733_v12 = vld [vmem:[#allocation17 + $0x70] sm:$0xff] }
0x114a   :  { %v2414_v14 = vpack.c.bf16 %v1734_v13, %v1733_v12  ;;  %v1907_v45 = vld [vmem:[#allocation20 + $0x68] sm:$0xff] }
0x114b   :  { %v1663_v49 = vmax.f32 %v1659_v48, 0.0  ;;  %v1653_v50 = vmul.f32 %v1649_v24, %v1645_v46  ;;  %v1904_v24 = vld [vmem:[#allocation20 + $0x50] sm:$0xff]  ;;  %v2435_v46 = vpack.c.bf16 %v1907_v45, %v1906_v44  ;;  %v1811_v48 = vpop.f32.mrb[12].mxu1 }
0x114c   :  { %v2432_v35 = vpack.c.bf16 %v1905_v34, %v1904_v24 }
0x114d   :  { %v1667_v53 = vpack.c.bf16 %v1663_v49, %v1662_v28  ;;  %v1661_v27 = vadd.f32 %v1657_v36, %v1653_v50  ;;  %v2321_v28 = vpop.f32.mrb[13].mxu1  ;;  %v1908_v49 = vld [vmem:[#allocation20 + $0x70] sm:$0xff]  ;;  %v1909_v50 = vld [vmem:[#allocation20 + $0x78] sm:$0xff] }
0x114e   :  { %v2438_v52 = vpack.c.bf16 %v1909_v50, %v1908_v49 }
0x114f   :  { %2310 = vmatpush3.bf16.msra.mxu0 %v1667_v53  ;;  %v1665_v54 = vmax.f32 %v1661_v27, 0.0  ;;  %v2064_v27 = vld [vmem:[#allocation19] ss:$0 sm:$0xff] }
0x1150   :  { %2311 = vmatprep.subr.bf16.mxu0 %v2923_v38 }
0x1151   :  { %v1668_v41 = vpack.c.bf16 %v1665_v54, %v1664_v47 }
0x1153   :  { %2312 = vmatpush3.bf16.msra.mxu0 %v1668_v41  ;;  %v2065_v41 = vld [vmem:[#allocation22] ss:$0 sm:$0xff] }
0x1154   :  { %2392 = vmatprep.subr.bf16.mxu0 %v2925_v42 }
0x1156   :  { %2314 = vmatmul.mubr.msk.bf16.vlgmr.msra.gmra.mrb[24].mxu0 %vm502_vm3, %v1666_v58 }
0x1157   :  { %2394 = vmatpush3.bf16.msra.mxu0 %v2393_v22  ;;  %2354 = vmatprep.mubr.msk.f32.mxu0 %vm2924_vm14, %v2923_v38  ;;  %v2429_v38 = vpack.c.bf16 %v1903_v32, %v1902_v31 }
0x1158   :  { %2395 = vmatprep.subr.bf16.mxu0 %v2925_v42 }
0x1159   :  { %2430 = vmatpush3.bf16.msra.mxu1 %v2429_v38 }
0x115a   :  { %2431 = vmatprep.subr.bf16.mxu1 %v2925_v42 }
0x115b   :  { %2397 = vmatpush3.bf16.msra.mxu0 %v2396_v60 }
0x115c   :  { %2398 = vmatprep.subr.bf16.mxu0 %v2925_v42 }
0x115d   :  { %2433 = vmatpush3.bf16.msra.mxu1 %v2432_v35 }
0x115e   :  { %2434 = vmatprep.subr.bf16.mxu1 %v2925_v42 }
0x115f   :  { %2400 = vmatpush3.bf16.msra.mxu0 %v2399_v61 }
0x1160   :  { %2401 = vmatprep.subr.bf16.mxu0 %v2925_v42 }
0x1161   :  { %2436 = vmatpush3.bf16.msra.mxu1 %v2435_v46 }
0x1162   :  { %2437 = vmatprep.subr.bf16.mxu1 %v2925_v42 }
0x1163   :  { %2403 = vmatpush3.bf16.msra.mxu0 %v2402_v1 }
0x1164   :  { %2404 = vmatprep.subr.bf16.mxu0 %v2925_v42 }
0x1165   :  { %2439 = vmatpush3.bf16.msra.mxu1 %v2438_v52 }
0x1167   :  { %2406 = vmatpush3.bf16.msra.mxu0 %v2405_v5 }
0x1168   :  { %2407 = vmatprep.subr.bf16.mxu0 %v2925_v42 }
0x116b   :  { %2409 = vmatpush3.bf16.msra.mxu0 %v2408_v8 }
0x116c   :  { %2410 = vmatprep.subr.bf16.mxu0 %v2925_v42 }
0x116f   :  { %2412 = vmatpush3.bf16.msra.mxu0 %v2411_v11 }
0x1170   :  { %2413 = vmatprep.subr.bf16.mxu0 %v2925_v42 }
0x1173   :  { %2415 = vmatpush3.bf16.msra.mxu0 %v2414_v14 }
0x1229   :  { %v1706_v2 = vpop.f32.mrb[24].mxu0 }
0x122a   :  { %v1718_v36 = vmul.f32 %v1716_v37, %v1706_v2  ;;  %v2315_v39 = vpop.f32.mrb[25].mxu0 }
0x122b   :  { %v1709_v40 = vpop.f32.mrb[26].mxu0 }
0x122c   :  { %v2316_v43 = vpop.f32.mrb[27].mxu0  ;;  %2355 = vmatmul.mubr.f32.vlgmr.msra.gmra.mrb[28].mxu0 %v1718_v36 }
0x12ff   :  { %v1881_v53 = vpop.f32.mrb[28].mxu0 }
0x1300   :  { %v1882_v47 = vadd.f32 %v1881_v53, %v1811_v48  ;;  %v2356_v54 = vpop.f32.mrb[29].mxu0 }
0x1302   :  { %v1892_v55 = vadd.f32 %v2064_v27, %v1882_v47 }
0x1304   :  { %v1893_v33 = vmax.f32 %v1892_v55, 0.0 }
0x1306   :  { %2390 = vmatmul.mubr.f32.vlgmr.msra.gmra.mrb[14].mxu1 %v1893_v33 }
0x13d9   :  { %v1983_v58 = vpop.f32.mrb[14].mxu1 }
0x13da   :  { %v1984_v22 = vadd.f32 %v2065_v41, %v1983_v58  ;;  %v2391_v57 = vpop.f32.mrb[15].mxu1 }
0x13dc   :  { %1988 = vst.msk [vmem:[#allocation23] sm:$0x3] %vm1987_vm1, %v1984_v22 }
0x13dd   :  { %2877 = shalt.err (!%p2874_p10)
}
0x13de   :  { %s2878_s24 = scalar_lea.hbm %s3371_s13, 32 }
0x13df   :  { %p2879_p11 = scmp.ne.s32.totalorder %s3371_s13, %s2878_s24  ;;  %p2882_p12 = scmp.lt.u32.totalorder %s2878_s24, %s3371_s13 }
0x13e1   :  { %p2884_p13 = pnand %p2882_p12, %p2879_p11 }
0x13e3   :  { %2887 = shalt.err (!%p2884_p13)
}
0x13e4   :  { %1998 = dma.vmem_to_hbm [thread:$0]  %s1996_s6, 32, %s3371_s13, [#allocation4]  }
0x13e5   :  { %2902 = dma.done.wait [#allocation4], 32  }
0x13e6   :  { %2903 = vsyncadd [#allocation4], 4294967264 }
0x13e7   :  { %2002 = vsyncpa [#allocation3], 1 }
0x13e8   :  { %2003 = vsyncpa [#allocation6], 1 }
0x13e9   :  { %2004 = vsyncpa [#allocation9], 1 }
0x13ea   :  { %2005 = vsyncpa [#allocation12], 1 }
0x13eb   :  { %2006 = vsyncpa [#allocation15], 1 }
0x13ec   :  { %2007 = vsyncpa [#allocation18], 1 }
0x13ed   :  { %2008 = vsyncpa [#allocation21], 1 }
0x13ee   :  { %2009 = vsyncpa [#allocation4], 1 }

</bundles_post_ra>
